<compile_context>
chip_gen: v6e
topology: v6e:2x2x1
jax: 0.10.0
libtpu: 0.0.40
codegen_flags: <defaults>
</compile_context>

<pallas_src>
import functools

import jax
import jax.numpy as jnp
from jax import lax
from jax.experimental import pallas as pl
from jax.experimental.pallas import tpu as pltpu


def seq2seq_kernel(x_all_ref, wih_all_ref, b_all_ref,
                   whh_e_ref, whh_d_ref,
                   wlin_ref, blin_ref,
                   out_ref,
                   *, batch, seq_len, target_len, hidden_size):
    """Whole forward pass in one invocation (all operands resident in VMEM).

    Gate order follows PyTorch: [i, f, g, o] along the 4*H axis.
    x_all_ref:   ((seq_len+target_len)*B, D)  [x_enc rows ; x_dec rows], flattened time-major
    wih_all_ref: (D, 8H)   [W_ih_enc | W_ih_dec] concatenated along N
    b_all_ref:   (1, 8H)   [b_enc | b_dec]
    whh_*_ref:   (H, 4H)
    wlin_ref:    (H, D), blin_ref: (1, D)
    out_ref:     (target_len*B, D)
    """
    H = hidden_size
    B = batch
    n_enc = seq_len * B

    whh_e = whh_e_ref[...]   # (H, 4H)
    whh_d = whh_d_ref[...]   # (H, 4H)

    # ---- prologue (off the serial chain): ONE fused 8H-wide input projection ----
    # Replaces 14 tiny per-step matmuls; fills the 256-wide MXU on v6e/v7x.
    gx_all = (jnp.dot(x_all_ref[...], wih_all_ref[...],
                      preferred_element_type=jnp.float32) + b_all_ref[...])
    gx_enc = gx_all[:n_enc, 0 * H:4 * H]      # (seq_len*B, 4H), encoder half of N
    gx_dec = gx_all[n_enc:, 4 * H:8 * H]      # (target_len*B, 4H), decoder half of N

    # Hoisted lane constants over the [i|f|g|o] 4H axis.
    lane = lax.broadcasted_iota(jnp.int32, (B, 4 * H), 1)
    is_g = (lane >= 2 * H) & (lane < 3 * H)
    # 0.5 on i/f/o lanes (sigmoid via tanh half-angle), 1.0 on g lanes (plain tanh).
    pre_scale = jnp.where(is_g, jnp.float32(1.0), jnp.float32(0.5))

    def cell(gates_x, h, c, whh):
        # Only the recurrent matmul remains on the serial chain.
        # TODO(synk): stage whh in the MXU weight registers across the unrolled loop
        # (pltpu.matmul_push_rhs / matmul_acc_lhs / matmul_pop) to avoid re-pushing the
        # same (H,4H) RHS every step; left on jnp.dot for robust f32 lowering.
        gates = gates_x + jnp.dot(h, whh, preferred_element_type=jnp.float32)
        # ONE full-width EUP launch; sigmoid(x) = 0.5*tanh(x/2) + 0.5 on i/f/o lanes.
        t = jnp.tanh(gates * pre_scale)
        act = jnp.where(is_g, t, 0.5 * t + 0.5)
        i = act[:, 0 * H:1 * H]
        f = act[:, 1 * H:2 * H]
        g = act[:, 2 * H:3 * H]
        o = act[:, 3 * H:4 * H]
        c_new = f * c + i * g
        h_new = o * jnp.tanh(c_new)
        return h_new, c_new

    h = jnp.zeros((B, H), jnp.float32)
    c = jnp.zeros((B, H), jnp.float32)

    # ---- encoder recurrence (statically unrolled; seq_len is static) ----
    for t in range(seq_len):
        h, c = cell(gx_enc[t * B:(t + 1) * B, :], h, c, whh_e)

    # ---- decoder recurrence: teacher forcing; h_t kept in registers ----
    hs = []
    for t in range(target_len):
        h, c = cell(gx_dec[t * B:(t + 1) * B, :], h, c, whh_d)
        hs.append(h)                       # < 2 vregs of live data even at B=8

    # Single batched output projection + single store (no VMEM round-trip).
    h_all = jnp.concatenate(hs, axis=0)    # (target_len*B, H)
    y = (jnp.dot(h_all, wlin_ref[...],
                 preferred_element_type=jnp.float32) + blin_ref[...])
    out_ref[...] = y

    # TODO(synk): at real batch sizes, add a parallel batch grid axis
    # (dimension_semantics=("parallel",)) to light up v7x's second TensorCore;
    # pointless at this footprint.


def make_params(key, input_dim, hidden_size):
    """Deterministic parameter init, shapes matching nn.LSTM / nn.Linear (PyTorch)."""
    D, H = input_dim, hidden_size
    k = 1.0 / jnp.sqrt(jnp.float32(H))
    keys = jax.random.split(key, 10)
    u = lambda kk, shape: jax.random.uniform(kk, shape, jnp.float32, -k, k)
    params = dict(
        # encoder LSTM
        enc_w_ih=u(keys[0], (4 * H, D)),
        enc_w_hh=u(keys[1], (4 * H, H)),
        enc_b_ih=u(keys[2], (4 * H,)),
        enc_b_hh=u(keys[3], (4 * H,)),
        # decoder LSTM
        dec_w_ih=u(keys[4], (4 * H, D)),
        dec_w_hh=u(keys[5], (4 * H, H)),
        dec_b_ih=u(keys[6], (4 * H,)),
        dec_b_hh=u(keys[7], (4 * H,)),
        # decoder Linear(H -> D)
        lin_w=u(keys[8], (D, H)),
        lin_b=u(keys[9], (D,)),
    )
    return params


def lstm_seq2seq_forward(input_tensor, target_tensor, target_len, params, hidden_size):
    """Wrapper: layout glue (batch pad to a sublane tile, transposes, flattening,
    teacher-forcing shift, weight fusion) + pallas_call."""
    seq_len, B, D = input_tensor.shape
    H = hidden_size
    B_pad = max(8, ((B + 7) // 8) * 8)      # one full sublane tile per step

    wih_e = params["enc_w_ih"].T                          # (D, 4H)
    whh_e = params["enc_w_hh"].T                          # (H, 4H)
    b_e = (params["enc_b_ih"] + params["enc_b_hh"]).reshape(1, 4 * H)
    wih_d = params["dec_w_ih"].T
    whh_d = params["dec_w_hh"].T
    b_d = (params["dec_b_ih"] + params["dec_b_hh"]).reshape(1, 4 * H)
    wlin = params["lin_w"].T                              # (H, D)
    blin = params["lin_b"].reshape(1, D)

    # Fuse the two input-projection weights along N: (D, 8H) / (1, 8H).
    wih_all = jnp.concatenate([wih_e, wih_d], axis=1)
    b_all = jnp.concatenate([b_e, b_d], axis=1)

    # Teacher-forcing decoder inputs: [input[-1], target[0], ..., target[target_len-2]]
    dec_inputs = jnp.concatenate(
        [input_tensor[-1:], target_tensor[:target_len - 1]], axis=0)

    # Pad batch to B_pad (pure layout plumbing; padded rows sliced off below).
    pad = B_pad - B
    x_enc = jnp.pad(input_tensor, ((0, 0), (0, pad), (0, 0)))
    x_dec = jnp.pad(dec_inputs, ((0, 0), (0, pad), (0, 0)))
    x_all = jnp.concatenate(
        [x_enc.reshape(seq_len * B_pad, D), x_dec.reshape(target_len * B_pad, D)],
        axis=0)                                           # ((seq+tgt)*B_pad, D)

    vmem = pl.BlockSpec(memory_space=pltpu.MemorySpace.VMEM)
    out2d = pl.pallas_call(
        functools.partial(seq2seq_kernel, batch=B_pad, seq_len=seq_len,
                          target_len=target_len, hidden_size=H),
        out_shape=jax.ShapeDtypeStruct((target_len * B_pad, D), jnp.float32),
        in_specs=[vmem] * 7,
        out_specs=vmem,
    )(x_all, wih_all, b_all, whh_e, whh_d, wlin, blin)
    return out2d.reshape(target_len, B_pad, D)[:, :B, :]


def reference_forward(input_tensor, target_tensor, target_len, params, hidden_size):
    """Plain-JAX reference of the same teacher-forced forward, for verification."""
    seq_len, B, D = input_tensor.shape
    H = hidden_size

    def cell(x, h, c, w_ih, w_hh, b_ih, b_hh):
        gates = x @ w_ih.T + h @ w_hh.T + b_ih + b_hh
        i = jax.nn.sigmoid(gates[:, 0 * H:1 * H])
        f = jax.nn.sigmoid(gates[:, 1 * H:2 * H])
        g = jnp.tanh(gates[:, 2 * H:3 * H])
        o = jax.nn.sigmoid(gates[:, 3 * H:4 * H])
        c = f * c + i * g
        h = o * jnp.tanh(c)
        return h, c

    h = jnp.zeros((B, H), jnp.float32)
    c = jnp.zeros((B, H), jnp.float32)
    for t in range(seq_len):
        h, c = cell(input_tensor[t], h, c,
                    params["enc_w_ih"], params["enc_w_hh"],
                    params["enc_b_ih"], params["enc_b_hh"])
    x = input_tensor[-1]
    outs = []
    for t in range(target_len):
        h, c = cell(x, h, c,
                    params["dec_w_ih"], params["dec_w_hh"],
                    params["dec_b_ih"], params["dec_b_hh"])
        y = h @ params["lin_w"].T + params["lin_b"]
        outs.append(y)
        x = target_tensor[t]
    return jnp.stack(outs, axis=0)


if __name__ == "__main__":
    # Small shapes consistent with the module's forward:
    #   input_tensor:  (seq_len, batch, input_dim)
    #   target_tensor: (target_len, batch, input_dim)
    input_dim = 8
    hidden_size = 32
    batch = 2
    seq_len = 8
    target_len = 6

    key = jax.random.PRNGKey(0)
    k_in, k_tgt, k_par = jax.random.split(key, 3)
    input_tensor = jax.random.normal(k_in, (seq_len, batch, input_dim), jnp.float32)
    target_tensor = jax.random.normal(k_tgt, (target_len, batch, input_dim), jnp.float32)
    params = make_params(k_par, input_dim, hidden_size)

    out = lstm_seq2seq_forward(input_tensor, target_tensor, target_len, params, hidden_size)
    out = jax.block_until_ready(out)

    ref = reference_forward(input_tensor, target_tensor, target_len, params, hidden_size)
    assert out.shape == (target_len, batch, input_dim)
    # Slightly relaxed tolerance: reordered (batched/fused) matmuls + MXU f32 precision
    # + sigmoid recovered via the tanh half-angle identity.
    assert jnp.allclose(out, ref, atol=1e-4, rtol=1e-4), "kernel mismatch vs reference"

    print("KERNEL_OK")
</pallas_src>

<mosaic_0001>
module attributes {stable_mosaic.version = 11 : i64} {
  func.func @seq2seq_kernel(%arg0: memref<112x8xf32, #tpu.memory_space<vmem>>, %arg1: memref<8x256xf32, #tpu.memory_space<vmem>>, %arg2: memref<1x256xf32, #tpu.memory_space<vmem>>, %arg3: memref<32x128xf32, #tpu.memory_space<vmem>>, %arg4: memref<32x128xf32, #tpu.memory_space<vmem>>, %arg5: memref<32x8xf32, #tpu.memory_space<vmem>>, %arg6: memref<1x8xf32, #tpu.memory_space<vmem>>, %arg7: memref<48x8xf32, #tpu.memory_space<vmem>>) attributes {dimension_semantics = [], scalar_prefetch = 0 : i64, scratch_operands = 0 : i64, tpu.core_type = #tpu.core_type<tc>} {
    %c0 = arith.constant 0 : index
    %c0_0 = arith.constant 0 : index
    %0 = vector.load %arg3[%c0, %c0_0] : memref<32x128xf32, #tpu.memory_space<vmem>>, vector<32x128xf32>
    %c0_1 = arith.constant 0 : index
    %c0_2 = arith.constant 0 : index
    %1 = vector.load %arg4[%c0_1, %c0_2] : memref<32x128xf32, #tpu.memory_space<vmem>>, vector<32x128xf32>
    %c0_3 = arith.constant 0 : index
    %c0_4 = arith.constant 0 : index
    %2 = vector.load %arg0[%c0_3, %c0_4] : memref<112x8xf32, #tpu.memory_space<vmem>>, vector<112x8xf32>
    %c0_5 = arith.constant 0 : index
    %c0_6 = arith.constant 0 : index
    %3 = vector.load %arg1[%c0_5, %c0_6] : memref<8x256xf32, #tpu.memory_space<vmem>>, vector<8x256xf32>
    %cst = arith.constant dense<0.000000e+00> : vector<112x256xf32>
    %4 = tpu.matmul %2, %3, %cst {dimension_numbers = #tpu.dot_dimension_numbers<[1], [0], [0], [1], [0, 0, 1, 1], [], []>} : vector<112x8xf32>, vector<8x256xf32>, vector<112x256xf32> -> vector<112x256xf32>
    %c0_7 = arith.constant 0 : index
    %c0_8 = arith.constant 0 : index
    %5 = vector.load %arg2[%c0_7, %c0_8] : memref<1x256xf32, #tpu.memory_space<vmem>>, vector<1x256xf32>
    %6 = vector.broadcast %5 : vector<1x256xf32> to vector<112x256xf32>
    %7 = arith.addf %4, %6 : vector<112x256xf32>
    %8 = vector.extract_strided_slice %7 {offsets = [0, 0], sizes = [64, 128], strides = [1, 1]} : vector<112x256xf32> to vector<64x128xf32>
    %9 = vector.extract_strided_slice %7 {offsets = [64, 128], sizes = [48, 128], strides = [1, 1]} : vector<112x256xf32> to vector<48x128xf32>
    %10 = tpu.iota {dimensions = array<i32: 1>} : vector<8x128xi32>
    %c64_i32 = arith.constant 64 : i32
    %11 = vector.broadcast %c64_i32 : i32 to vector<8x128xi32>
    %12 = arith.cmpi sge, %10, %11 : vector<8x128xi32>
    %c96_i32 = arith.constant 96 : i32
    %13 = vector.broadcast %c96_i32 : i32 to vector<8x128xi32>
    %14 = arith.cmpi slt, %10, %13 : vector<8x128xi32>
    %15 = arith.andi %12, %14 : vector<8x128xi1>
    %cst_9 = arith.constant 1.000000e+00 : f32
    %cst_10 = arith.constant 5.000000e-01 : f32
    %16 = vector.broadcast %cst_9 : f32 to vector<8x128xf32>
    %17 = vector.broadcast %cst_10 : f32 to vector<8x128xf32>
    %18 = arith.select %15, %16, %17 : vector<8x128xi1>, vector<8x128xf32>
    %cst_11 = arith.constant 0.000000e+00 : f32
    %19 = vector.broadcast %cst_11 : f32 to vector<8x32xf32>
    %cst_12 = arith.constant 0.000000e+00 : f32
    %20 = vector.broadcast %cst_12 : f32 to vector<8x32xf32>
    %21 = vector.extract_strided_slice %8 {offsets = [0, 0], sizes = [8, 128], strides = [1, 1]} : vector<64x128xf32> to vector<8x128xf32>
    %cst_13 = arith.constant dense<0.000000e+00> : vector<8x128xf32>
    %22 = tpu.matmul %19, %0, %cst_13 {dimension_numbers = #tpu.dot_dimension_numbers<[1], [0], [0], [1], [0, 0, 1, 1], [], []>} : vector<8x32xf32>, vector<32x128xf32>, vector<8x128xf32> -> vector<8x128xf32>
    %23 = arith.addf %21, %22 : vector<8x128xf32>
    %24 = arith.mulf %23, %18 : vector<8x128xf32>
    %25 = math.tanh %24 : vector<8x128xf32>
    %cst_14 = arith.constant 5.000000e-01 : f32
    %26 = vector.broadcast %cst_14 : f32 to vector<8x128xf32>
    %27 = arith.mulf %26, %25 : vector<8x128xf32>
    %cst_15 = arith.constant 5.000000e-01 : f32
    %28 = vector.broadcast %cst_15 : f32 to vector<8x128xf32>
    %29 = arith.addf %27, %28 : vector<8x128xf32>
    %30 = arith.select %15, %25, %29 : vector<8x128xi1>, vector<8x128xf32>
    %31 = vector.extract_strided_slice %30 {offsets = [0, 0], sizes = [8, 32], strides = [1, 1]} : vector<8x128xf32> to vector<8x32xf32>
    %32 = vector.extract_strided_slice %30 {offsets = [0, 32], sizes = [8, 32], strides = [1, 1]} : vector<8x128xf32> to vector<8x32xf32>
    %33 = vector.extract_strided_slice %30 {offsets = [0, 64], sizes = [8, 32], strides = [1, 1]} : vector<8x128xf32> to vector<8x32xf32>
    %34 = vector.extract_strided_slice %30 {offsets = [0, 96], sizes = [8, 32], strides = [1, 1]} : vector<8x128xf32> to vector<8x32xf32>
    %35 = arith.mulf %32, %20 : vector<8x32xf32>
    %36 = arith.mulf %31, %33 : vector<8x32xf32>
    %37 = arith.addf %35, %36 : vector<8x32xf32>
    %38 = math.tanh %37 : vector<8x32xf32>
    %39 = arith.mulf %34, %38 : vector<8x32xf32>
    %40 = vector.extract_strided_slice %8 {offsets = [8, 0], sizes = [8, 128], strides = [1, 1]} : vector<64x128xf32> to vector<8x128xf32>
    %cst_16 = arith.constant dense<0.000000e+00> : vector<8x128xf32>
    %41 = tpu.matmul %39, %0, %cst_16 {dimension_numbers = #tpu.dot_dimension_numbers<[1], [0], [0], [1], [0, 0, 1, 1], [], []>} : vector<8x32xf32>, vector<32x128xf32>, vector<8x128xf32> -> vector<8x128xf32>
    %42 = arith.addf %40, %41 : vector<8x128xf32>
    %43 = arith.mulf %42, %18 : vector<8x128xf32>
    %44 = math.tanh %43 : vector<8x128xf32>
    %cst_17 = arith.constant 5.000000e-01 : f32
    %45 = vector.broadcast %cst_17 : f32 to vector<8x128xf32>
    %46 = arith.mulf %45, %44 : vector<8x128xf32>
    %cst_18 = arith.constant 5.000000e-01 : f32
    %47 = vector.broadcast %cst_18 : f32 to vector<8x128xf32>
    %48 = arith.addf %46, %47 : vector<8x128xf32>
    %49 = arith.select %15, %44, %48 : vector<8x128xi1>, vector<8x128xf32>
    %50 = vector.extract_strided_slice %49 {offsets = [0, 0], sizes = [8, 32], strides = [1, 1]} : vector<8x128xf32> to vector<8x32xf32>
    %51 = vector.extract_strided_slice %49 {offsets = [0, 32], sizes = [8, 32], strides = [1, 1]} : vector<8x128xf32> to vector<8x32xf32>
    %52 = vector.extract_strided_slice %49 {offsets = [0, 64], sizes = [8, 32], strides = [1, 1]} : vector<8x128xf32> to vector<8x32xf32>
    %53 = vector.extract_strided_slice %49 {offsets = [0, 96], sizes = [8, 32], strides = [1, 1]} : vector<8x128xf32> to vector<8x32xf32>
    %54 = arith.mulf %51, %37 : vector<8x32xf32>
    %55 = arith.mulf %50, %52 : vector<8x32xf32>
    %56 = arith.addf %54, %55 : vector<8x32xf32>
    %57 = math.tanh %56 : vector<8x32xf32>
    %58 = arith.mulf %53, %57 : vector<8x32xf32>
    %59 = vector.extract_strided_slice %8 {offsets = [16, 0], sizes = [8, 128], strides = [1, 1]} : vector<64x128xf32> to vector<8x128xf32>
    %cst_19 = arith.constant dense<0.000000e+00> : vector<8x128xf32>
    %60 = tpu.matmul %58, %0, %cst_19 {dimension_numbers = #tpu.dot_dimension_numbers<[1], [0], [0], [1], [0, 0, 1, 1], [], []>} : vector<8x32xf32>, vector<32x128xf32>, vector<8x128xf32> -> vector<8x128xf32>
    %61 = arith.addf %59, %60 : vector<8x128xf32>
    %62 = arith.mulf %61, %18 : vector<8x128xf32>
    %63 = math.tanh %62 : vector<8x128xf32>
    %cst_20 = arith.constant 5.000000e-01 : f32
    %64 = vector.broadcast %cst_20 : f32 to vector<8x128xf32>
    %65 = arith.mulf %64, %63 : vector<8x128xf32>
    %cst_21 = arith.constant 5.000000e-01 : f32
    %66 = vector.broadcast %cst_21 : f32 to vector<8x128xf32>
    %67 = arith.addf %65, %66 : vector<8x128xf32>
    %68 = arith.select %15, %63, %67 : vector<8x128xi1>, vector<8x128xf32>
    %69 = vector.extract_strided_slice %68 {offsets = [0, 0], sizes = [8, 32], strides = [1, 1]} : vector<8x128xf32> to vector<8x32xf32>
    %70 = vector.extract_strided_slice %68 {offsets = [0, 32], sizes = [8, 32], strides = [1, 1]} : vector<8x128xf32> to vector<8x32xf32>
    %71 = vector.extract_strided_slice %68 {offsets = [0, 64], sizes = [8, 32], strides = [1, 1]} : vector<8x128xf32> to vector<8x32xf32>
    %72 = vector.extract_strided_slice %68 {offsets = [0, 96], sizes = [8, 32], strides = [1, 1]} : vector<8x128xf32> to vector<8x32xf32>
    %73 = arith.mulf %70, %56 : vector<8x32xf32>
    %74 = arith.mulf %69, %71 : vector<8x32xf32>
    %75 = arith.addf %73, %74 : vector<8x32xf32>
    %76 = math.tanh %75 : vector<8x32xf32>
    %77 = arith.mulf %72, %76 : vector<8x32xf32>
    %78 = vector.extract_strided_slice %8 {offsets = [24, 0], sizes = [8, 128], strides = [1, 1]} : vector<64x128xf32> to vector<8x128xf32>
    %cst_22 = arith.constant dense<0.000000e+00> : vector<8x128xf32>
    %79 = tpu.matmul %77, %0, %cst_22 {dimension_numbers = #tpu.dot_dimension_numbers<[1], [0], [0], [1], [0, 0, 1, 1], [], []>} : vector<8x32xf32>, vector<32x128xf32>, vector<8x128xf32> -> vector<8x128xf32>
    %80 = arith.addf %78, %79 : vector<8x128xf32>
    %81 = arith.mulf %80, %18 : vector<8x128xf32>
    %82 = math.tanh %81 : vector<8x128xf32>
    %cst_23 = arith.constant 5.000000e-01 : f32
    %83 = vector.broadcast %cst_23 : f32 to vector<8x128xf32>
    %84 = arith.mulf %83, %82 : vector<8x128xf32>
    %cst_24 = arith.constant 5.000000e-01 : f32
    %85 = vector.broadcast %cst_24 : f32 to vector<8x128xf32>
    %86 = arith.addf %84, %85 : vector<8x128xf32>
    %87 = arith.select %15, %82, %86 : vector<8x128xi1>, vector<8x128xf32>
    %88 = vector.extract_strided_slice %87 {offsets = [0, 0], sizes = [8, 32], strides = [1, 1]} : vector<8x128xf32> to vector<8x32xf32>
    %89 = vector.extract_strided_slice %87 {offsets = [0, 32], sizes = [8, 32], strides = [1, 1]} : vector<8x128xf32> to vector<8x32xf32>
    %90 = vector.extract_strided_slice %87 {offsets = [0, 64], sizes = [8, 32], strides = [1, 1]} : vector<8x128xf32> to vector<8x32xf32>
    %91 = vector.extract_strided_slice %87 {offsets = [0, 96], sizes = [8, 32], strides = [1, 1]} : vector<8x128xf32> to vector<8x32xf32>
    %92 = arith.mulf %89, %75 : vector<8x32xf32>
    %93 = arith.mulf %88, %90 : vector<8x32xf32>
    %94 = arith.addf %92, %93 : vector<8x32xf32>
    %95 = math.tanh %94 : vector<8x32xf32>
    %96 = arith.mulf %91, %95 : vector<8x32xf32>
    %97 = vector.extract_strided_slice %8 {offsets = [32, 0], sizes = [8, 128], strides = [1, 1]} : vector<64x128xf32> to vector<8x128xf32>
    %cst_25 = arith.constant dense<0.000000e+00> : vector<8x128xf32>
    %98 = tpu.matmul %96, %0, %cst_25 {dimension_numbers = #tpu.dot_dimension_numbers<[1], [0], [0], [1], [0, 0, 1, 1], [], []>} : vector<8x32xf32>, vector<32x128xf32>, vector<8x128xf32> -> vector<8x128xf32>
    %99 = arith.addf %97, %98 : vector<8x128xf32>
    %100 = arith.mulf %99, %18 : vector<8x128xf32>
    %101 = math.tanh %100 : vector<8x128xf32>
    %cst_26 = arith.constant 5.000000e-01 : f32
    %102 = vector.broadcast %cst_26 : f32 to vector<8x128xf32>
    %103 = arith.mulf %102, %101 : vector<8x128xf32>
    %cst_27 = arith.constant 5.000000e-01 : f32
    %104 = vector.broadcast %cst_27 : f32 to vector<8x128xf32>
    %105 = arith.addf %103, %104 : vector<8x128xf32>
    %106 = arith.select %15, %101, %105 : vector<8x128xi1>, vector<8x128xf32>
    %107 = vector.extract_strided_slice %106 {offsets = [0, 0], sizes = [8, 32], strides = [1, 1]} : vector<8x128xf32> to vector<8x32xf32>
    %108 = vector.extract_strided_slice %106 {offsets = [0, 32], sizes = [8, 32], strides = [1, 1]} : vector<8x128xf32> to vector<8x32xf32>
    %109 = vector.extract_strided_slice %106 {offsets = [0, 64], sizes = [8, 32], strides = [1, 1]} : vector<8x128xf32> to vector<8x32xf32>
    %110 = vector.extract_strided_slice %106 {offsets = [0, 96], sizes = [8, 32], strides = [1, 1]} : vector<8x128xf32> to vector<8x32xf32>
    %111 = arith.mulf %108, %94 : vector<8x32xf32>
    %112 = arith.mulf %107, %109 : vector<8x32xf32>
    %113 = arith.addf %111, %112 : vector<8x32xf32>
    %114 = math.tanh %113 : vector<8x32xf32>
    %115 = arith.mulf %110, %114 : vector<8x32xf32>
    %116 = vector.extract_strided_slice %8 {offsets = [40, 0], sizes = [8, 128], strides = [1, 1]} : vector<64x128xf32> to vector<8x128xf32>
    %cst_28 = arith.constant dense<0.000000e+00> : vector<8x128xf32>
    %117 = tpu.matmul %115, %0, %cst_28 {dimension_numbers = #tpu.dot_dimension_numbers<[1], [0], [0], [1], [0, 0, 1, 1], [], []>} : vector<8x32xf32>, vector<32x128xf32>, vector<8x128xf32> -> vector<8x128xf32>
    %118 = arith.addf %116, %117 : vector<8x128xf32>
    %119 = arith.mulf %118, %18 : vector<8x128xf32>
    %120 = math.tanh %119 : vector<8x128xf32>
    %cst_29 = arith.constant 5.000000e-01 : f32
    %121 = vector.broadcast %cst_29 : f32 to vector<8x128xf32>
    %122 = arith.mulf %121, %120 : vector<8x128xf32>
    %cst_30 = arith.constant 5.000000e-01 : f32
    %123 = vector.broadcast %cst_30 : f32 to vector<8x128xf32>
    %124 = arith.addf %122, %123 : vector<8x128xf32>
    %125 = arith.select %15, %120, %124 : vector<8x128xi1>, vector<8x128xf32>
    %126 = vector.extract_strided_slice %125 {offsets = [0, 0], sizes = [8, 32], strides = [1, 1]} : vector<8x128xf32> to vector<8x32xf32>
    %127 = vector.extract_strided_slice %125 {offsets = [0, 32], sizes = [8, 32], strides = [1, 1]} : vector<8x128xf32> to vector<8x32xf32>
    %128 = vector.extract_strided_slice %125 {offsets = [0, 64], sizes = [8, 32], strides = [1, 1]} : vector<8x128xf32> to vector<8x32xf32>
    %129 = vector.extract_strided_slice %125 {offsets = [0, 96], sizes = [8, 32], strides = [1, 1]} : vector<8x128xf32> to vector<8x32xf32>
    %130 = arith.mulf %127, %113 : vector<8x32xf32>
    %131 = arith.mulf %126, %128 : vector<8x32xf32>
    %132 = arith.addf %130, %131 : vector<8x32xf32>
    %133 = math.tanh %132 : vector<8x32xf32>
    %134 = arith.mulf %129, %133 : vector<8x32xf32>
    %135 = vector.extract_strided_slice %8 {offsets = [48, 0], sizes = [8, 128], strides = [1, 1]} : vector<64x128xf32> to vector<8x128xf32>
    %cst_31 = arith.constant dense<0.000000e+00> : vector<8x128xf32>
    %136 = tpu.matmul %134, %0, %cst_31 {dimension_numbers = #tpu.dot_dimension_numbers<[1], [0], [0], [1], [0, 0, 1, 1], [], []>} : vector<8x32xf32>, vector<32x128xf32>, vector<8x128xf32> -> vector<8x128xf32>
    %137 = arith.addf %135, %136 : vector<8x128xf32>
    %138 = arith.mulf %137, %18 : vector<8x128xf32>
    %139 = math.tanh %138 : vector<8x128xf32>
    %cst_32 = arith.constant 5.000000e-01 : f32
    %140 = vector.broadcast %cst_32 : f32 to vector<8x128xf32>
    %141 = arith.mulf %140, %139 : vector<8x128xf32>
    %cst_33 = arith.constant 5.000000e-01 : f32
    %142 = vector.broadcast %cst_33 : f32 to vector<8x128xf32>
    %143 = arith.addf %141, %142 : vector<8x128xf32>
    %144 = arith.select %15, %139, %143 : vector<8x128xi1>, vector<8x128xf32>
    %145 = vector.extract_strided_slice %144 {offsets = [0, 0], sizes = [8, 32], strides = [1, 1]} : vector<8x128xf32> to vector<8x32xf32>
    %146 = vector.extract_strided_slice %144 {offsets = [0, 32], sizes = [8, 32], strides = [1, 1]} : vector<8x128xf32> to vector<8x32xf32>
    %147 = vector.extract_strided_slice %144 {offsets = [0, 64], sizes = [8, 32], strides = [1, 1]} : vector<8x128xf32> to vector<8x32xf32>
    %148 = vector.extract_strided_slice %144 {offsets = [0, 96], sizes = [8, 32], strides = [1, 1]} : vector<8x128xf32> to vector<8x32xf32>
    %149 = arith.mulf %146, %132 : vector<8x32xf32>
    %150 = arith.mulf %145, %147 : vector<8x32xf32>
    %151 = arith.addf %149, %150 : vector<8x32xf32>
    %152 = math.tanh %151 : vector<8x32xf32>
    %153 = arith.mulf %148, %152 : vector<8x32xf32>
    %154 = vector.extract_strided_slice %8 {offsets = [56, 0], sizes = [8, 128], strides = [1, 1]} : vector<64x128xf32> to vector<8x128xf32>
    %cst_34 = arith.constant dense<0.000000e+00> : vector<8x128xf32>
    %155 = tpu.matmul %153, %0, %cst_34 {dimension_numbers = #tpu.dot_dimension_numbers<[1], [0], [0], [1], [0, 0, 1, 1], [], []>} : vector<8x32xf32>, vector<32x128xf32>, vector<8x128xf32> -> vector<8x128xf32>
    %156 = arith.addf %154, %155 : vector<8x128xf32>
    %157 = arith.mulf %156, %18 : vector<8x128xf32>
    %158 = math.tanh %157 : vector<8x128xf32>
    %cst_35 = arith.constant 5.000000e-01 : f32
    %159 = vector.broadcast %cst_35 : f32 to vector<8x128xf32>
    %160 = arith.mulf %159, %158 : vector<8x128xf32>
    %cst_36 = arith.constant 5.000000e-01 : f32
    %161 = vector.broadcast %cst_36 : f32 to vector<8x128xf32>
    %162 = arith.addf %160, %161 : vector<8x128xf32>
    %163 = arith.select %15, %158, %162 : vector<8x128xi1>, vector<8x128xf32>
    %164 = vector.extract_strided_slice %163 {offsets = [0, 0], sizes = [8, 32], strides = [1, 1]} : vector<8x128xf32> to vector<8x32xf32>
    %165 = vector.extract_strided_slice %163 {offsets = [0, 32], sizes = [8, 32], strides = [1, 1]} : vector<8x128xf32> to vector<8x32xf32>
    %166 = vector.extract_strided_slice %163 {offsets = [0, 64], sizes = [8, 32], strides = [1, 1]} : vector<8x128xf32> to vector<8x32xf32>
    %167 = vector.extract_strided_slice %163 {offsets = [0, 96], sizes = [8, 32], strides = [1, 1]} : vector<8x128xf32> to vector<8x32xf32>
    %168 = arith.mulf %165, %151 : vector<8x32xf32>
    %169 = arith.mulf %164, %166 : vector<8x32xf32>
    %170 = arith.addf %168, %169 : vector<8x32xf32>
    %171 = math.tanh %170 : vector<8x32xf32>
    %172 = arith.mulf %167, %171 : vector<8x32xf32>
    %173 = vector.extract_strided_slice %9 {offsets = [0, 0], sizes = [8, 128], strides = [1, 1]} : vector<48x128xf32> to vector<8x128xf32>
    %cst_37 = arith.constant dense<0.000000e+00> : vector<8x128xf32>
    %174 = tpu.matmul %172, %1, %cst_37 {dimension_numbers = #tpu.dot_dimension_numbers<[1], [0], [0], [1], [0, 0, 1, 1], [], []>} : vector<8x32xf32>, vector<32x128xf32>, vector<8x128xf32> -> vector<8x128xf32>
    %175 = arith.addf %173, %174 : vector<8x128xf32>
    %176 = arith.mulf %175, %18 : vector<8x128xf32>
    %177 = math.tanh %176 : vector<8x128xf32>
    %cst_38 = arith.constant 5.000000e-01 : f32
    %178 = vector.broadcast %cst_38 : f32 to vector<8x128xf32>
    %179 = arith.mulf %178, %177 : vector<8x128xf32>
    %cst_39 = arith.constant 5.000000e-01 : f32
    %180 = vector.broadcast %cst_39 : f32 to vector<8x128xf32>
    %181 = arith.addf %179, %180 : vector<8x128xf32>
    %182 = arith.select %15, %177, %181 : vector<8x128xi1>, vector<8x128xf32>
    %183 = vector.extract_strided_slice %182 {offsets = [0, 0], sizes = [8, 32], strides = [1, 1]} : vector<8x128xf32> to vector<8x32xf32>
    %184 = vector.extract_strided_slice %182 {offsets = [0, 32], sizes = [8, 32], strides = [1, 1]} : vector<8x128xf32> to vector<8x32xf32>
    %185 = vector.extract_strided_slice %182 {offsets = [0, 64], sizes = [8, 32], strides = [1, 1]} : vector<8x128xf32> to vector<8x32xf32>
    %186 = vector.extract_strided_slice %182 {offsets = [0, 96], sizes = [8, 32], strides = [1, 1]} : vector<8x128xf32> to vector<8x32xf32>
    %187 = arith.mulf %184, %170 : vector<8x32xf32>
    %188 = arith.mulf %183, %185 : vector<8x32xf32>
    %189 = arith.addf %187, %188 : vector<8x32xf32>
    %190 = math.tanh %189 : vector<8x32xf32>
    %191 = arith.mulf %186, %190 : vector<8x32xf32>
    %192 = vector.extract_strided_slice %9 {offsets = [8, 0], sizes = [8, 128], strides = [1, 1]} : vector<48x128xf32> to vector<8x128xf32>
    %cst_40 = arith.constant dense<0.000000e+00> : vector<8x128xf32>
    %193 = tpu.matmul %191, %1, %cst_40 {dimension_numbers = #tpu.dot_dimension_numbers<[1], [0], [0], [1], [0, 0, 1, 1], [], []>} : vector<8x32xf32>, vector<32x128xf32>, vector<8x128xf32> -> vector<8x128xf32>
    %194 = arith.addf %192, %193 : vector<8x128xf32>
    %195 = arith.mulf %194, %18 : vector<8x128xf32>
    %196 = math.tanh %195 : vector<8x128xf32>
    %cst_41 = arith.constant 5.000000e-01 : f32
    %197 = vector.broadcast %cst_41 : f32 to vector<8x128xf32>
    %198 = arith.mulf %197, %196 : vector<8x128xf32>
    %cst_42 = arith.constant 5.000000e-01 : f32
    %199 = vector.broadcast %cst_42 : f32 to vector<8x128xf32>
    %200 = arith.addf %198, %199 : vector<8x128xf32>
    %201 = arith.select %15, %196, %200 : vector<8x128xi1>, vector<8x128xf32>
    %202 = vector.extract_strided_slice %201 {offsets = [0, 0], sizes = [8, 32], strides = [1, 1]} : vector<8x128xf32> to vector<8x32xf32>
    %203 = vector.extract_strided_slice %201 {offsets = [0, 32], sizes = [8, 32], strides = [1, 1]} : vector<8x128xf32> to vector<8x32xf32>
    %204 = vector.extract_strided_slice %201 {offsets = [0, 64], sizes = [8, 32], strides = [1, 1]} : vector<8x128xf32> to vector<8x32xf32>
    %205 = vector.extract_strided_slice %201 {offsets = [0, 96], sizes = [8, 32], strides = [1, 1]} : vector<8x128xf32> to vector<8x32xf32>
    %206 = arith.mulf %203, %189 : vector<8x32xf32>
    %207 = arith.mulf %202, %204 : vector<8x32xf32>
    %208 = arith.addf %206, %207 : vector<8x32xf32>
    %209 = math.tanh %208 : vector<8x32xf32>
    %210 = arith.mulf %205, %209 : vector<8x32xf32>
    %211 = vector.extract_strided_slice %9 {offsets = [16, 0], sizes = [8, 128], strides = [1, 1]} : vector<48x128xf32> to vector<8x128xf32>
    %cst_43 = arith.constant dense<0.000000e+00> : vector<8x128xf32>
    %212 = tpu.matmul %210, %1, %cst_43 {dimension_numbers = #tpu.dot_dimension_numbers<[1], [0], [0], [1], [0, 0, 1, 1], [], []>} : vector<8x32xf32>, vector<32x128xf32>, vector<8x128xf32> -> vector<8x128xf32>
    %213 = arith.addf %211, %212 : vector<8x128xf32>
    %214 = arith.mulf %213, %18 : vector<8x128xf32>
    %215 = math.tanh %214 : vector<8x128xf32>
    %cst_44 = arith.constant 5.000000e-01 : f32
    %216 = vector.broadcast %cst_44 : f32 to vector<8x128xf32>
    %217 = arith.mulf %216, %215 : vector<8x128xf32>
    %cst_45 = arith.constant 5.000000e-01 : f32
    %218 = vector.broadcast %cst_45 : f32 to vector<8x128xf32>
    %219 = arith.addf %217, %218 : vector<8x128xf32>
    %220 = arith.select %15, %215, %219 : vector<8x128xi1>, vector<8x128xf32>
    %221 = vector.extract_strided_slice %220 {offsets = [0, 0], sizes = [8, 32], strides = [1, 1]} : vector<8x128xf32> to vector<8x32xf32>
    %222 = vector.extract_strided_slice %220 {offsets = [0, 32], sizes = [8, 32], strides = [1, 1]} : vector<8x128xf32> to vector<8x32xf32>
    %223 = vector.extract_strided_slice %220 {offsets = [0, 64], sizes = [8, 32], strides = [1, 1]} : vector<8x128xf32> to vector<8x32xf32>
    %224 = vector.extract_strided_slice %220 {offsets = [0, 96], sizes = [8, 32], strides = [1, 1]} : vector<8x128xf32> to vector<8x32xf32>
    %225 = arith.mulf %222, %208 : vector<8x32xf32>
    %226 = arith.mulf %221, %223 : vector<8x32xf32>
    %227 = arith.addf %225, %226 : vector<8x32xf32>
    %228 = math.tanh %227 : vector<8x32xf32>
    %229 = arith.mulf %224, %228 : vector<8x32xf32>
    %230 = vector.extract_strided_slice %9 {offsets = [24, 0], sizes = [8, 128], strides = [1, 1]} : vector<48x128xf32> to vector<8x128xf32>
    %cst_46 = arith.constant dense<0.000000e+00> : vector<8x128xf32>
    %231 = tpu.matmul %229, %1, %cst_46 {dimension_numbers = #tpu.dot_dimension_numbers<[1], [0], [0], [1], [0, 0, 1, 1], [], []>} : vector<8x32xf32>, vector<32x128xf32>, vector<8x128xf32> -> vector<8x128xf32>
    %232 = arith.addf %230, %231 : vector<8x128xf32>
    %233 = arith.mulf %232, %18 : vector<8x128xf32>
    %234 = math.tanh %233 : vector<8x128xf32>
    %cst_47 = arith.constant 5.000000e-01 : f32
    %235 = vector.broadcast %cst_47 : f32 to vector<8x128xf32>
    %236 = arith.mulf %235, %234 : vector<8x128xf32>
    %cst_48 = arith.constant 5.000000e-01 : f32
    %237 = vector.broadcast %cst_48 : f32 to vector<8x128xf32>
    %238 = arith.addf %236, %237 : vector<8x128xf32>
    %239 = arith.select %15, %234, %238 : vector<8x128xi1>, vector<8x128xf32>
    %240 = vector.extract_strided_slice %239 {offsets = [0, 0], sizes = [8, 32], strides = [1, 1]} : vector<8x128xf32> to vector<8x32xf32>
    %241 = vector.extract_strided_slice %239 {offsets = [0, 32], sizes = [8, 32], strides = [1, 1]} : vector<8x128xf32> to vector<8x32xf32>
    %242 = vector.extract_strided_slice %239 {offsets = [0, 64], sizes = [8, 32], strides = [1, 1]} : vector<8x128xf32> to vector<8x32xf32>
    %243 = vector.extract_strided_slice %239 {offsets = [0, 96], sizes = [8, 32], strides = [1, 1]} : vector<8x128xf32> to vector<8x32xf32>
    %244 = arith.mulf %241, %227 : vector<8x32xf32>
    %245 = arith.mulf %240, %242 : vector<8x32xf32>
    %246 = arith.addf %244, %245 : vector<8x32xf32>
    %247 = math.tanh %246 : vector<8x32xf32>
    %248 = arith.mulf %243, %247 : vector<8x32xf32>
    %249 = vector.extract_strided_slice %9 {offsets = [32, 0], sizes = [8, 128], strides = [1, 1]} : vector<48x128xf32> to vector<8x128xf32>
    %cst_49 = arith.constant dense<0.000000e+00> : vector<8x128xf32>
    %250 = tpu.matmul %248, %1, %cst_49 {dimension_numbers = #tpu.dot_dimension_numbers<[1], [0], [0], [1], [0, 0, 1, 1], [], []>} : vector<8x32xf32>, vector<32x128xf32>, vector<8x128xf32> -> vector<8x128xf32>
    %251 = arith.addf %249, %250 : vector<8x128xf32>
    %252 = arith.mulf %251, %18 : vector<8x128xf32>
    %253 = math.tanh %252 : vector<8x128xf32>
    %cst_50 = arith.constant 5.000000e-01 : f32
    %254 = vector.broadcast %cst_50 : f32 to vector<8x128xf32>
    %255 = arith.mulf %254, %253 : vector<8x128xf32>
    %cst_51 = arith.constant 5.000000e-01 : f32
    %256 = vector.broadcast %cst_51 : f32 to vector<8x128xf32>
    %257 = arith.addf %255, %256 : vector<8x128xf32>
    %258 = arith.select %15, %253, %257 : vector<8x128xi1>, vector<8x128xf32>
    %259 = vector.extract_strided_slice %258 {offsets = [0, 0], sizes = [8, 32], strides = [1, 1]} : vector<8x128xf32> to vector<8x32xf32>
    %260 = vector.extract_strided_slice %258 {offsets = [0, 32], sizes = [8, 32], strides = [1, 1]} : vector<8x128xf32> to vector<8x32xf32>
    %261 = vector.extract_strided_slice %258 {offsets = [0, 64], sizes = [8, 32], strides = [1, 1]} : vector<8x128xf32> to vector<8x32xf32>
    %262 = vector.extract_strided_slice %258 {offsets = [0, 96], sizes = [8, 32], strides = [1, 1]} : vector<8x128xf32> to vector<8x32xf32>
    %263 = arith.mulf %260, %246 : vector<8x32xf32>
    %264 = arith.mulf %259, %261 : vector<8x32xf32>
    %265 = arith.addf %263, %264 : vector<8x32xf32>
    %266 = math.tanh %265 : vector<8x32xf32>
    %267 = arith.mulf %262, %266 : vector<8x32xf32>
    %268 = vector.extract_strided_slice %9 {offsets = [40, 0], sizes = [8, 128], strides = [1, 1]} : vector<48x128xf32> to vector<8x128xf32>
    %cst_52 = arith.constant dense<0.000000e+00> : vector<8x128xf32>
    %269 = tpu.matmul %267, %1, %cst_52 {dimension_numbers = #tpu.dot_dimension_numbers<[1], [0], [0], [1], [0, 0, 1, 1], [], []>} : vector<8x32xf32>, vector<32x128xf32>, vector<8x128xf32> -> vector<8x128xf32>
    %270 = arith.addf %268, %269 : vector<8x128xf32>
    %271 = arith.mulf %270, %18 : vector<8x128xf32>
    %272 = math.tanh %271 : vector<8x128xf32>
    %cst_53 = arith.constant 5.000000e-01 : f32
    %273 = vector.broadcast %cst_53 : f32 to vector<8x128xf32>
    %274 = arith.mulf %273, %272 : vector<8x128xf32>
    %cst_54 = arith.constant 5.000000e-01 : f32
    %275 = vector.broadcast %cst_54 : f32 to vector<8x128xf32>
    %276 = arith.addf %274, %275 : vector<8x128xf32>
    %277 = arith.select %15, %272, %276 : vector<8x128xi1>, vector<8x128xf32>
    %278 = vector.extract_strided_slice %277 {offsets = [0, 0], sizes = [8, 32], strides = [1, 1]} : vector<8x128xf32> to vector<8x32xf32>
    %279 = vector.extract_strided_slice %277 {offsets = [0, 32], sizes = [8, 32], strides = [1, 1]} : vector<8x128xf32> to vector<8x32xf32>
    %280 = vector.extract_strided_slice %277 {offsets = [0, 64], sizes = [8, 32], strides = [1, 1]} : vector<8x128xf32> to vector<8x32xf32>
    %281 = vector.extract_strided_slice %277 {offsets = [0, 96], sizes = [8, 32], strides = [1, 1]} : vector<8x128xf32> to vector<8x32xf32>
    %282 = arith.mulf %279, %265 : vector<8x32xf32>
    %283 = arith.mulf %278, %280 : vector<8x32xf32>
    %284 = arith.addf %282, %283 : vector<8x32xf32>
    %285 = math.tanh %284 : vector<8x32xf32>
    %286 = arith.mulf %281, %285 : vector<8x32xf32>
    %287 = tpu.concatenate %191, %210, %229, %248, %267, %286 in 0 : vector<8x32xf32>, vector<8x32xf32>, vector<8x32xf32>, vector<8x32xf32>, vector<8x32xf32>, vector<8x32xf32> -> vector<48x32xf32>
    %c0_55 = arith.constant 0 : index
    %c0_56 = arith.constant 0 : index
    %288 = vector.load %arg5[%c0_55, %c0_56] : memref<32x8xf32, #tpu.memory_space<vmem>>, vector<32x8xf32>
    %cst_57 = arith.constant dense<0.000000e+00> : vector<48x8xf32>
    %289 = tpu.matmul %287, %288, %cst_57 {dimension_numbers = #tpu.dot_dimension_numbers<[1], [0], [0], [1], [0, 0, 1, 1], [], []>} : vector<48x32xf32>, vector<32x8xf32>, vector<48x8xf32> -> vector<48x8xf32>
    %c0_58 = arith.constant 0 : index
    %c0_59 = arith.constant 0 : index
    %290 = vector.load %arg6[%c0_58, %c0_59] : memref<1x8xf32, #tpu.memory_space<vmem>>, vector<1x8xf32>
    %291 = vector.broadcast %290 : vector<1x8xf32> to vector<48x8xf32>
    %292 = arith.addf %289, %291 : vector<48x8xf32>
    %c0_60 = arith.constant 0 : index
    %c0_61 = arith.constant 0 : index
    %293 = vector.load %arg7[%c0_60, %c0_61] : memref<48x8xf32, #tpu.memory_space<vmem>>, vector<48x8xf32>
    tpu.vector_store %arg7[%c0_60, %c0_61], %292 {strides = array<i32>} : memref<48x8xf32, #tpu.memory_space<vmem>>, vector<48x8xf32>,
    return
  }
}

</mosaic_0001>

<bundles_post_ra>
// kernel: tpu_custom_call.1
= control target key start
LH: loop header
LB: loop body
LE: loop exit
PB: predicated region body
PF: predicated region fallthrough
CT: control target
= control target key end

     0   :  { %v2084_v2 = vmov 0.0   ;;  %vm62_vm0 = vcmask 64512   ;;  %vm2085_vm1 = vmmov 0   ;;  %v52_v21 = vlaneseq  ;;  %s2088_s16 = smov 32   ;;  %s2608_s1 = inlined_call_operand.vmem [shape: f32[8,256], index: 1, kind: input, shape index: {}]   ;;  %s2609_s0 = inlined_call_operand.vmem [shape: f32[112,8], index: 0, kind: input, shape index: {}]   ;;  %s2610_s3 = inlined_call_operand.vmem [shape: f32[32,128], index: 3, kind: input, shape index: {}]   ;;  %s2611_s2 = inlined_call_operand.vmem [shape: f32[1,256], index: 2, kind: input, shape index: {}]   ;;  %s2612_s4 = inlined_call_operand.vmem [shape: f32[32,128], index: 4, kind: input, shape index: {}]   ;;  %s2613_s5 = inlined_call_operand.vmem [shape: f32[32,8], index: 5, kind: input, shape index: {}]   ;;  %s2614_s6 = inlined_call_operand.vmem [shape: f32[1,8], index: 6, kind: input, shape index: {}]   ;;  %s2615_s7 = inlined_call_operand.vmem [shape: f32[48,8], index: 7, kind: output, shape index: {}]  }
   0x1   :  { %v49_v0 = vld [vmem:[%s2608_s1 + $0x8] sm:$0xff]  ;;  %v48_v1 = vld [vmem:[%s2608_s1] sm:$0xff]  ;;  %169 = vmatprep.mubr.f32.mxu0 %v2084_v2  ;;  %1863 = vmatprep.subr.mxu1 %v2084_v2  ;;  %v2143_v4 = vld [vmem:[%s2610_s3 + $0x18] sm:$0xff]  ;;  %vm246_vm5 = vcmask 261120  }
   0x2   :  { %v34_v3 = vld [vmem:[%s2609_s0] sm:$0xff]  ;;  %135 = vmatprep.subr.mxu0 %v49_v0  ;;  %1871 = vmatprep.mubr.msk.f32.mxu1 %vm2085_vm1, %v2084_v2  ;;  %v2153_v5 = vld [vmem:[%s2610_s3 + $0x10] sm:$0xff]  ;;  %v35_v6 = vld [vmem:[%s2609_s0 + $0x8] sm:$0xff]  ;;  %v53_v22 = vshrl.u32 %v52_v21, 7  ;;  %v241_v60 = vand.u32 127, %v52_v21 }
   0x3   :  { %136 = vmatpush1.msra.mxu0 %v48_v1  ;;  %1864 = vmatpush3.msra.mxu1 %v2143_v4  ;;  %v2164_v7 = vld [vmem:[%s2610_s3 + $0x8] sm:$0xff]  ;;  %v2174_v8 = vld [vmem:[%s2610_s3] sm:$0xff]  ;;  %v36_v9 = vld [vmem:[%s2609_s0 + $0x10] sm:$0xff] }
   0x4   :  { %1738 = vmatmul.mubr.msk.f32.vlgmr.msra.gmra.mxu0 %vm62_vm0, %v34_v3  ;;  %1852 = vmatprep.subr.mxu0 %v2084_v2  ;;  %v37_v10 = vld [vmem:[%s2609_s0 + $0x18] sm:$0xff]  ;;  %v38_v11 = vld [vmem:[%s2609_s0 + $0x20] sm:$0xff]  ;;  %v39_v12 = vld [vmem:[%s2609_s0 + $0x28] sm:$0xff]  ;;  %v54_v23 = vsub.s32 0, %v53_v22  ;;  %v58_v50 = vsub.s32 1, %v53_v22  ;;  %vm242_vm2 = vcmp.ge.s32.totalorder %v241_v60, 64 }
   0x5   :  { %1853 = vmatpush3.msra.mxu0 %v2143_v4  ;;  %174 = vmatprep.mubr.f32.mxu0 %v2084_v2  ;;  %v40_v13 = vld [vmem:[%s2609_s0 + $0x30] sm:$0xff]  ;;  %v41_v14 = vld [vmem:[%s2609_s0 + $0x38] sm:$0xff]  ;;  %v42_v15 = vld [vmem:[%s2609_s0 + $0x40] sm:$0xff]  ;;  %vm243_vm3 = vcmp.lt.s32.totalorder %v241_v60, 96 }
   0x6   :  { %1854 = vmatprep.subr.mxu0 %v2084_v2  ;;  %1865 = vmatprep.subr.mxu1 %v2084_v2  ;;  %v43_v16 = vld [vmem:[%s2609_s0 + $0x48] sm:$0xff]  ;;  %v44_v17 = vld [vmem:[%s2609_s0 + $0x50] sm:$0xff]  ;;  %v45_v18 = vld [vmem:[%s2609_s0 + $0x58] sm:$0xff] }
   0x7   :  { %1855 = vmatpush3.msra.mxu0 %v2153_v5  ;;  %1866 = vmatpush3.msra.mxu1 %v2153_v5  ;;  %v46_v19 = vld [vmem:[%s2609_s0 + $0x60] sm:$0xff]  ;;  %v47_v20 = vld [vmem:[%s2609_s0 + $0x68] sm:$0xff]  ;;  %vm2291_vm4 = vmand %vm242_vm2, %vm243_vm3 }
   0x8   :  { %1739 = vmatmul.mubr.msk.f32.gmra.mxu0 %vm62_vm0, %v35_v6  ;;  %1856 = vmatprep.subr.mxu0 %v2084_v2  ;;  %v50_v24 = vld [vmem:[%s2611_s2] sm:$0x3]  ;;  %s2087_s2 = smov 64  }
   0x9   :  { %179 = vmatprep.mubr.f32.mxu0 %v2084_v2  ;;  %1857 = vmatpush3.msra.mxu0 %v2164_v7  ;;  %v55_v27 = vrot.slane %v50_v24, %v54_v23  ;;  %v2277_v53 = vrot.slane %v50_v24, %v58_v50 }
   0xa   :  { %1858 = vmatprep.subr.mxu0 %v2084_v2  ;;  %1867 = vmatprep.subr.mxu1 %v2084_v2 }
   0xb   :  { %1859 = vmatpush3.msra.mxu0 %v2174_v8  ;;  %1868 = vmatpush3.msra.mxu1 %v2164_v7 }
   0xc   :  { %1740 = vmatmul.mubr.msk.f32.gmra.mxu0 %vm62_vm0, %v36_v9  ;;  %1869 = vmatprep.subr.mxu1 %v2084_v2 }
   0xd   :  { %184 = vmatprep.mubr.f32.mxu0 %v2084_v2  ;;  %1870 = vmatpush3.msra.mxu1 %v2174_v8 }
   0xe   :  { %1874 = vmatprep.subr.mxu1 %v2084_v2  ;;  %1929 = vmatprep.subr.mxu0 %v2084_v2 }
  0x10   :  { %1741 = vmatmul.mubr.msk.f32.gmra.mxu0 %vm62_vm0, %v37_v10 }
  0x11   :  { %189 = vmatprep.mubr.f32.mxu0 %v2084_v2 }
  0x14   :  { %1742 = vmatmul.mubr.msk.f32.gmra.mxu0 %vm62_vm0, %v38_v11 }
  0x15   :  { %194 = vmatprep.mubr.f32.mxu0 %v2084_v2 }
  0x18   :  { %1743 = vmatmul.mubr.msk.f32.gmra.mxu0 %vm62_vm0, %v39_v12  ;;  %v2086_v12 = vmov 0.5  }
  0x19   :  { %199 = vmatprep.mubr.f32.mxu0 %v2084_v2 }
  0x1c   :  { %1744 = vmatmul.mubr.msk.f32.gmra.mxu0 %vm62_vm0, %v40_v13  ;;  %v2300_v13 = vsel %vm2291_vm4, 1.0, %v2086_v12 }
  0x1d   :  { %204 = vmatprep.mubr.f32.mxu0 %v2084_v2 }
  0x20   :  { %1745 = vmatmul.mubr.msk.f32.gmra.mxu0 %vm62_vm0, %v41_v14 }
  0x21   :  { %209 = vmatprep.mubr.f32.mxu0 %v2084_v2 }
  0x24   :  { %1746 = vmatmul.mubr.msk.f32.gmra.mxu0 %vm62_vm0, %v42_v15 }
  0x25   :  { %214 = vmatprep.mubr.f32.mxu0 %v2084_v2 }
  0x28   :  { %1747 = vmatmul.mubr.msk.f32.gmra.mxu0 %vm62_vm0, %v43_v16 }
  0x29   :  { %219 = vmatprep.mubr.f32.mxu0 %v2084_v2 }
  0x2c   :  { %1748 = vmatmul.mubr.msk.f32.gmra.mxu0 %vm62_vm0, %v44_v17 }
  0x2d   :  { %224 = vmatprep.mubr.f32.mxu0 %v2084_v2 }
  0x30   :  { %1749 = vmatmul.mubr.msk.f32.gmra.mxu0 %vm62_vm0, %v45_v18 }
  0x31   :  { %229 = vmatprep.mubr.f32.mxu0 %v2084_v2 }
  0x34   :  { %1750 = vmatmul.mubr.msk.f32.gmra.mxu0 %vm62_vm0, %v46_v19 }
  0x35   :  { %234 = vmatprep.mubr.f32.mxu0 %v2084_v2 }
  0x38   :  { %1751 = vmatmul.mubr.msk.f32.gmra.mxu0 %vm62_vm0, %v47_v20 }
  0x39   :  { %1860 = vmatprep.mubr.msk.f32.mxu0 %vm2085_vm1, %v2084_v2 }
  0x3c   :  { %1861 = vmatmul.mubr.f32.vlgmr.msra.gmra.mxu0 %v2084_v2 }
  0x3d   :  { %1930 = vmatpush3.msra.mxu0 %v2143_v4  ;;  %1937 = vmatprep.mubr.msk.f32.mxu0 %vm2085_vm1, %v2084_v2 }
  0x3e   :  { %1931 = vmatprep.subr.mxu0 %v2084_v2 }
  0x3f   :  { %1932 = vmatpush3.msra.mxu0 %v2153_v5 }
  0x40   :  { %1933 = vmatprep.subr.mxu0 %v2084_v2 }
  0x41   :  { %1934 = vmatpush3.msra.mxu0 %v2164_v7 }
  0x42   :  { %1935 = vmatprep.subr.mxu0 %v2084_v2 }
  0x43   :  { %1936 = vmatpush3.msra.mxu0 %v2174_v8 }
  0x44   :  { %1951 = vmatprep.subr.mxu0 %v2084_v2 }
  0xc4   :  { %v171_v25 = vpop.f32.mrf.mxu0 }
  0xc5   :  { %v172_v10 = vadd.f32 %v171_v25, %v55_v27 }
  0xc6   :  { %v173_v26 = vpop.f32.mrf.mxu0 }
  0xc8   :  { %v176_v28 = vpop.f32.mrf.mxu0 }
  0xc9   :  { %v2261_v29 = vadd.f32 %v176_v28, %v55_v27 }
  0xca   :  { %v178_v30 = vpop.f32.mrf.mxu0 }
  0xcc   :  { %v181_v31 = vpop.f32.mrf.mxu0 }
  0xcd   :  { %v2263_v32 = vadd.f32 %v181_v31, %v55_v27 }
  0xce   :  { %v183_v33 = vpop.f32.mrf.mxu0 }
  0xd0   :  { %v186_v34 = vpop.f32.mrf.mxu0 }
  0xd1   :  { %v2265_v35 = vadd.f32 %v186_v34, %v55_v27 }
  0xd2   :  { %v188_v36 = vpop.f32.mrf.mxu0 }
  0xd4   :  { %v191_v37 = vpop.f32.mrf.mxu0 }
  0xd5   :  { %v2267_v38 = vadd.f32 %v191_v37, %v55_v27 }
  0xd6   :  { %v193_v39 = vpop.f32.mrf.mxu0 }
  0xd8   :  { %v196_v40 = vpop.f32.mrf.mxu0 }
  0xd9   :  { %v2269_v41 = vadd.f32 %v196_v40, %v55_v27 }
  0xda   :  { %v198_v42 = vpop.f32.mrf.mxu0 }
  0xdc   :  { %v201_v43 = vpop.f32.mrf.mxu0 }
  0xdd   :  { %v2271_v44 = vadd.f32 %v201_v43, %v55_v27 }
  0xde   :  { %v203_v45 = vpop.f32.mrf.mxu0 }
  0xe0   :  { %v206_v46 = vpop.f32.mrf.mxu0 }
  0xe1   :  { %v2273_v47 = vadd.f32 %v206_v46, %v55_v27 }
  0xe2   :  { %v208_v48 = vpop.f32.mrf.mxu0 }
  0xe4   :  { %v211_v49 = vpop.f32.mrf.mxu0 }
  0xe6   :  { %v2275_v51 = vpop.f32.mrf.mxu0 }
  0xe8   :  { %v216_v52 = vpop.f32.mrf.mxu0 }
  0xea   :  { %v217_v54 = vpop.f32.mrf.mxu0 }
  0xeb   :  { %v2280_v55 = vadd.f32 %v217_v54, %v2277_v53 }
  0xec   :  { %v221_v56 = vpop.f32.mrf.mxu0 }
  0xee   :  { %v222_v57 = vpop.f32.mrf.mxu0 }
  0xef   :  { %v2283_v58 = vadd.f32 %v222_v57, %v2277_v53 }
  0xf0   :  { %v226_v59 = vpop.f32.mrf.mxu0 }
  0xf2   :  { %v227_v61 = vpop.f32.mrf.mxu0 }
  0xf3   :  { %v2286_v62 = vadd.f32 %v227_v61, %v2277_v53 }
  0xf4   :  { %v231_v63 = vpop.f32.mrf.mxu0 }
  0xf6   :  { %v232_v0 = vpop.f32.mrf.mxu0 }
  0xf7   :  { %v2289_v1 = vadd.f32 %v232_v0, %v2277_v53 }
  0xf8   :  { %v236_v3 = vpop.f32.mrf.mxu0 }
  0xfa   :  { %v237_v9 = vpop.f32.mrf.mxu0 }
  0xfb   :  { %v2296_v11 = vadd.f32 %v237_v9, %v2277_v53 }
  0xfc   :  { %v316_v14 = vpop.f32.mrf.mxu0 }
  0xfd   :  { %v320_v15 = vadd.f32 %v316_v14, %v172_v10 }
  0xfe   :  { %v1862_v16 = vpop.f32.mrf.mxu0 }
  0xff   :  { %v321_v17 = vmul.f32 %v320_v15, %v2300_v13 }
 0x101   :  { %2028 = vtanh.f32 %v321_v17 }
 0x10e   :  { %v2029_v18 = vpop.eup %2028 }
 0x10f   :  { %v323_v19 = vmul.f32 0.5, %v2029_v18 }
 0x111   :  { %v324_v20 = vadd.f32 0.5, %v323_v19 }
 0x113   :  { %v325_v21 = vsel %vm2291_vm4, %v2029_v18, %v324_v20 }
 0x114   :  { %328 = vrot.lane.b32.xlu0 %v325_v21, %s2087_s2  ;;  %v326_v24 = vmul.f32 0.0, %v325_v21 }
 0x186   :  { %v329_v22 = vpop.permute.xlu0 %328 }
 0x187   :  { %v331_v23 = vmul.f32 %v329_v22, %v325_v21 }
 0x189   :  { %333 = vrot.lane.b32.xlu0 %v331_v23, %s2088_s16 }
 0x1fb   :  { %v334_v25 = vpop.permute.xlu0 %333 }
 0x1fc   :  { %v336_v26 = vadd.f32 %v334_v25, %v326_v24 }
 0x1fe   :  { %2030 = vtanh.f32 %v336_v26 }
 0x20b   :  { %v2031_v27 = vpop.eup %2030 }
 0x20c   :  { %339 = vrot.lane.b32.xlu1 %v2031_v27, %s2087_s2 }
 0x27e   :  { %v340_v28 = vpop.permute.xlu1 %339 }
 0x27f   :  { %v342_v30 = vmul.f32 %v340_v28, %v325_v21 }
 0x281   :  { %344 = vrot.lane.b32.xlu1 %v342_v30, %s2088_s16 }
 0x2f3   :  { %v345_v31 = vpop.permute.xlu1 %344 }
 0x2f4   :  { %1872 = vmatmul.mubr.msk.f32.vlgmr.msra.gmra.mxu1 %vm246_vm5, %v345_v31 }
 0x2f5   :  { %1875 = vmatpush3.msra.mxu1 %v2143_v4  ;;  %1882 = vmatprep.mubr.msk.f32.mxu1 %vm2085_vm1, %v2084_v2 }
 0x2f6   :  { %1876 = vmatprep.subr.mxu1 %v2084_v2 }
 0x2f7   :  { %1877 = vmatpush3.msra.mxu1 %v2153_v5 }
 0x2f8   :  { %1878 = vmatprep.subr.mxu1 %v2084_v2 }
 0x2f9   :  { %1879 = vmatpush3.msra.mxu1 %v2164_v7 }
 0x2fa   :  { %1880 = vmatprep.subr.mxu1 %v2084_v2 }
 0x2fb   :  { %1881 = vmatpush3.msra.mxu1 %v2174_v8 }
 0x2fc   :  { %1885 = vmatprep.subr.mxu1 %v2084_v2 }
 0x3b4   :  { %v414_v33 = vpop.f32.mrf.mxu1 }
 0x3b5   :  { %v418_v34 = vadd.f32 %v414_v33, %v2261_v29 }
 0x3b6   :  { %v1873_v36 = vpop.f32.mrf.mxu1 }
 0x3b7   :  { %v419_v37 = vmul.f32 %v418_v34, %v2300_v13 }
 0x3b9   :  { %2032 = vtanh.f32 %v419_v37 }
 0x3c6   :  { %v2033_v39 = vpop.eup %2032 }
 0x3c7   :  { %v421_v40 = vmul.f32 0.5, %v2033_v39 }
 0x3c9   :  { %v422_v42 = vadd.f32 0.5, %v421_v40 }
 0x3cb   :  { %v423_v43 = vsel %vm2291_vm4, %v2033_v39, %v422_v42 }
 0x3cc   :  { %426 = vrot.lane.b32.xlu0 %v423_v43, %s2087_s2  ;;  %v424_v48 = vmul.f32 %v423_v43, %v336_v26 }
 0x43e   :  { %v427_v45 = vpop.permute.xlu0 %426 }
 0x43f   :  { %v429_v46 = vmul.f32 %v427_v45, %v423_v43 }
 0x441   :  { %431 = vrot.lane.b32.xlu1 %v429_v46, %s2088_s16 }
 0x4b3   :  { %v432_v49 = vpop.permute.xlu1 %431 }
 0x4b4   :  { %v434_v50 = vadd.f32 %v432_v49, %v424_v48 }
 0x4b6   :  { %2034 = vtanh.f32 %v434_v50 }
 0x4c3   :  { %v2035_v29 = vpop.eup %2034 }
 0x4c4   :  { %437 = vrot.lane.b32.xlu0 %v2035_v29, %s2087_s2 }
 0x536   :  { %v438_v52 = vpop.permute.xlu0 %437 }
 0x537   :  { %v440_v54 = vmul.f32 %v438_v52, %v423_v43 }
 0x539   :  { %442 = vrot.lane.b32.xlu1 %v440_v54, %s2088_s16 }
 0x5ab   :  { %v443_v56 = vpop.permute.xlu1 %442 }
 0x5ac   :  { %1883 = vmatmul.mubr.msk.f32.vlgmr.msra.gmra.mxu1 %vm246_vm5, %v443_v56 }
 0x5ad   :  { %1886 = vmatpush3.msra.mxu1 %v2143_v4  ;;  %1893 = vmatprep.mubr.msk.f32.mxu1 %vm2085_vm1, %v2084_v2 }
 0x5ae   :  { %1887 = vmatprep.subr.mxu1 %v2084_v2 }
 0x5af   :  { %1888 = vmatpush3.msra.mxu1 %v2153_v5 }
 0x5b0   :  { %1889 = vmatprep.subr.mxu1 %v2084_v2 }
 0x5b1   :  { %1890 = vmatpush3.msra.mxu1 %v2164_v7 }
 0x5b2   :  { %1891 = vmatprep.subr.mxu1 %v2084_v2 }
 0x5b3   :  { %1892 = vmatpush3.msra.mxu1 %v2174_v8 }
 0x5b4   :  { %1896 = vmatprep.subr.mxu1 %v2084_v2 }
 0x66c   :  { %v512_v57 = vpop.f32.mrf.mxu1 }
 0x66d   :  { %v516_v59 = vadd.f32 %v512_v57, %v2263_v32 }
 0x66e   :  { %v1884_v60 = vpop.f32.mrf.mxu1 }
 0x66f   :  { %v517_v61 = vmul.f32 %v516_v59, %v2300_v13 }
 0x671   :  { %2036 = vtanh.f32 %v517_v61 }
 0x67e   :  { %v2037_v63 = vpop.eup %2036 }
 0x67f   :  { %v519_v0 = vmul.f32 0.5, %v2037_v63 }
 0x681   :  { %v520_v3 = vadd.f32 0.5, %v519_v0 }
 0x683   :  { %v521_v9 = vsel %vm2291_vm4, %v2037_v63, %v520_v3 }
 0x684   :  { %524 = vrot.lane.b32.xlu0 %v521_v9, %s2087_s2  ;;  %v522_v14 = vmul.f32 %v521_v9, %v434_v50 }
 0x6f6   :  { %v525_v10 = vpop.permute.xlu0 %524 }
 0x6f7   :  { %v527_v12 = vmul.f32 %v525_v10, %v521_v9 }
 0x6f9   :  { %529 = vrot.lane.b32.xlu1 %v527_v12, %s2088_s16 }
 0x76b   :  { %v530_v15 = vpop.permute.xlu1 %529 }
 0x76c   :  { %v532_v16 = vadd.f32 %v530_v15, %v522_v14 }
 0x76e   :  { %2038 = vtanh.f32 %v532_v16 }
 0x77b   :  { %v2039_v32 = vpop.eup %2038 }
 0x77c   :  { %535 = vrot.lane.b32.xlu0 %v2039_v32, %s2087_s2 }
 0x7ee   :  { %v536_v17 = vpop.permute.xlu0 %535 }
 0x7ef   :  { %v538_v18 = vmul.f32 %v536_v17, %v521_v9 }
 0x7f1   :  { %540 = vrot.lane.b32.xlu1 %v538_v18, %s2088_s16 }
 0x863   :  { %v541_v19 = vpop.permute.xlu1 %540 }
 0x864   :  { %1894 = vmatmul.mubr.msk.f32.vlgmr.msra.gmra.mxu1 %vm246_vm5, %v541_v19 }
 0x865   :  { %1897 = vmatpush3.msra.mxu1 %v2143_v4  ;;  %1904 = vmatprep.mubr.msk.f32.mxu1 %vm2085_vm1, %v2084_v2 }
 0x866   :  { %1898 = vmatprep.subr.mxu1 %v2084_v2 }
 0x867   :  { %1899 = vmatpush3.msra.mxu1 %v2153_v5 }
 0x868   :  { %1900 = vmatprep.subr.mxu1 %v2084_v2 }
 0x869   :  { %1901 = vmatpush3.msra.mxu1 %v2164_v7 }
 0x86a   :  { %1902 = vmatprep.subr.mxu1 %v2084_v2 }
 0x86b   :  { %1903 = vmatpush3.msra.mxu1 %v2174_v8 }
 0x86c   :  { %1907 = vmatprep.subr.mxu1 %v2084_v2 }
 0x924   :  { %v610_v20 = vpop.f32.mrf.mxu1 }
 0x925   :  { %v614_v21 = vadd.f32 %v610_v20, %v2265_v35 }
 0x926   :  { %v1895_v22 = vpop.f32.mrf.mxu1 }
 0x927   :  { %v615_v23 = vmul.f32 %v614_v21, %v2300_v13 }
 0x929   :  { %2040 = vtanh.f32 %v615_v23 }
 0x936   :  { %v2041_v24 = vpop.eup %2040 }
 0x937   :  { %v617_v25 = vmul.f32 0.5, %v2041_v24 }
 0x939   :  { %v618_v26 = vadd.f32 0.5, %v617_v25 }
 0x93b   :  { %v619_v27 = vsel %vm2291_vm4, %v2041_v24, %v618_v26 }
 0x93c   :  { %622 = vrot.lane.b32.xlu0 %v619_v27, %s2087_s2  ;;  %v620_v31 = vmul.f32 %v619_v27, %v532_v16 }
 0x9ae   :  { %v623_v28 = vpop.permute.xlu0 %622 }
 0x9af   :  { %v625_v30 = vmul.f32 %v623_v28, %v619_v27 }
 0x9b1   :  { %627 = vrot.lane.b32.xlu1 %v625_v30, %s2088_s16 }
 0xa23   :  { %v628_v33 = vpop.permute.xlu1 %627 }
 0xa24   :  { %v630_v34 = vadd.f32 %v628_v33, %v620_v31 }
 0xa26   :  { %2042 = vtanh.f32 %v630_v34 }
 0xa33   :  { %v2043_v35 = vpop.eup %2042 }
 0xa34   :  { %633 = vrot.lane.b32.xlu0 %v2043_v35, %s2087_s2 }
 0xaa6   :  { %v634_v36 = vpop.permute.xlu0 %633 }
 0xaa7   :  { %v636_v37 = vmul.f32 %v634_v36, %v619_v27 }
 0xaa9   :  { %638 = vrot.lane.b32.xlu1 %v636_v37, %s2088_s16 }
 0xb1b   :  { %v639_v39 = vpop.permute.xlu1 %638 }
 0xb1c   :  { %1905 = vmatmul.mubr.msk.f32.vlgmr.msra.gmra.mxu1 %vm246_vm5, %v639_v39 }
 0xb1d   :  { %1908 = vmatpush3.msra.mxu1 %v2143_v4  ;;  %1915 = vmatprep.mubr.msk.f32.mxu1 %vm2085_vm1, %v2084_v2 }
 0xb1e   :  { %1909 = vmatprep.subr.mxu1 %v2084_v2 }
 0xb1f   :  { %1910 = vmatpush3.msra.mxu1 %v2153_v5 }
 0xb20   :  { %1911 = vmatprep.subr.mxu1 %v2084_v2 }
 0xb21   :  { %1912 = vmatpush3.msra.mxu1 %v2164_v7 }
 0xb22   :  { %1913 = vmatprep.subr.mxu1 %v2084_v2 }
 0xb23   :  { %1914 = vmatpush3.msra.mxu1 %v2174_v8 }
 0xb24   :  { %1918 = vmatprep.subr.mxu1 %v2084_v2 }
 0xbdc   :  { %v708_v40 = vpop.f32.mrf.mxu1 }
 0xbdd   :  { %v712_v42 = vadd.f32 %v708_v40, %v2267_v38 }
 0xbde   :  { %v1906_v43 = vpop.f32.mrf.mxu1 }
 0xbdf   :  { %v713_v45 = vmul.f32 %v712_v42, %v2300_v13 }
 0xbe1   :  { %2044 = vtanh.f32 %v713_v45 }
 0xbee   :  { %v2045_v46 = vpop.eup %2044 }
 0xbef   :  { %v715_v48 = vmul.f32 0.5, %v2045_v46 }
 0xbf1   :  { %v716_v49 = vadd.f32 0.5, %v715_v48 }
 0xbf3   :  { %v717_v50 = vsel %vm2291_vm4, %v2045_v46, %v716_v49 }
 0xbf4   :  { %720 = vrot.lane.b32.xlu0 %v717_v50, %s2087_s2  ;;  %v718_v54 = vmul.f32 %v717_v50, %v630_v34 }
 0xc66   :  { %v721_v29 = vpop.permute.xlu0 %720 }
 0xc67   :  { %v723_v52 = vmul.f32 %v721_v29, %v717_v50 }
 0xc69   :  { %725 = vrot.lane.b32.xlu1 %v723_v52, %s2088_s16 }
 0xcdb   :  { %v726_v56 = vpop.permute.xlu1 %725 }
 0xcdc   :  { %v728_v57 = vadd.f32 %v726_v56, %v718_v54  ;;  %v2432_v56 = vld [vmem:[%s2612_s4 + $0x10] sm:$0xff] }
 0xcde   :  { %2046 = vtanh.f32 %v728_v57 }
 0xceb   :  { %v2047_v38 = vpop.eup %2046 }
 0xcec   :  { %731 = vrot.lane.b32.xlu0 %v2047_v38, %s2087_s2  ;;  %v2449_v38 = vld [vmem:[%s2612_s4] sm:$0xff] }
 0xd5e   :  { %v732_v59 = vpop.permute.xlu0 %731 }
 0xd5f   :  { %v734_v60 = vmul.f32 %v732_v59, %v717_v50 }
 0xd61   :  { %736 = vrot.lane.b32.xlu1 %v734_v60, %s2088_s16 }
 0xdd3   :  { %v737_v61 = vpop.permute.xlu1 %736 }
 0xdd4   :  { %1916 = vmatmul.mubr.msk.f32.vlgmr.msra.gmra.mxu1 %vm246_vm5, %v737_v61 }
 0xdd5   :  { %1919 = vmatpush3.msra.mxu1 %v2143_v4  ;;  %1926 = vmatprep.mubr.msk.f32.mxu1 %vm2085_vm1, %v2084_v2 }
 0xdd6   :  { %1920 = vmatprep.subr.mxu1 %v2084_v2 }
 0xdd7   :  { %1921 = vmatpush3.msra.mxu1 %v2153_v5 }
 0xdd8   :  { %1922 = vmatprep.subr.mxu1 %v2084_v2 }
 0xdd9   :  { %1923 = vmatpush3.msra.mxu1 %v2164_v7 }
 0xdda   :  { %1924 = vmatprep.subr.mxu1 %v2084_v2 }
 0xddb   :  { %1925 = vmatpush3.msra.mxu1 %v2174_v8 }
 0xddc   :  { %1940 = vmatprep.subr.mxu1 %v2084_v2 }
 0xe94   :  { %v806_v63 = vpop.f32.mrf.mxu1 }
 0xe95   :  { %v810_v4 = vadd.f32 %v806_v63, %v2269_v41 }
 0xe96   :  { %v1917_v0 = vpop.f32.mrf.mxu1 }
 0xe97   :  { %v811_v3 = vmul.f32 %v810_v4, %v2300_v13  ;;  %v213_v4 = vadd.f32 %v2275_v51, %v2277_v53 }
 0xe99   :  { %2048 = vtanh.f32 %v811_v3 }
 0xea6   :  { %v2049_v9 = vpop.eup %2048 }
 0xea7   :  { %v813_v10 = vmul.f32 0.5, %v2049_v9 }
 0xea9   :  { %v814_v5 = vadd.f32 0.5, %v813_v10 }
 0xeab   :  { %v815_v12 = vsel %vm2291_vm4, %v2049_v9, %v814_v5 }
 0xeac   :  { %818 = vrot.lane.b32.xlu0 %v815_v12, %s2087_s2  ;;  %v816_v8 = vmul.f32 %v815_v12, %v728_v57  ;;  %v2440_v57 = vld [vmem:[%s2612_s4 + $0x8] sm:$0xff] }
 0xf1e   :  { %v819_v7 = vpop.permute.xlu0 %818 }
 0xf1f   :  { %v821_v14 = vmul.f32 %v819_v7, %v815_v12 }
 0xf21   :  { %823 = vrot.lane.b32.xlu1 %v821_v14, %s2088_s16 }
 0xf93   :  { %v824_v15 = vpop.permute.xlu1 %823 }
 0xf94   :  { %v826_v16 = vadd.f32 %v824_v15, %v816_v8 }
 0xf96   :  { %2050 = vtanh.f32 %v826_v16 }
 0xfa3   :  { %v2051_v41 = vpop.eup %2050 }
 0xfa4   :  { %829 = vrot.lane.b32.xlu0 %v2051_v41, %s2087_s2 }
0x1016   :  { %v830_v32 = vpop.permute.xlu0 %829 }
0x1017   :  { %v832_v17 = vmul.f32 %v830_v32, %v815_v12 }
0x1019   :  { %834 = vrot.lane.b32.xlu1 %v832_v17, %s2088_s16 }
0x108b   :  { %v835_v18 = vpop.permute.xlu1 %834 }
0x108c   :  { %1927 = vmatmul.mubr.msk.f32.vlgmr.msra.gmra.mxu1 %vm246_vm5, %v835_v18 }
0x108d   :  { %1948 = vmatprep.mubr.msk.f32.mxu1 %vm2085_vm1, %v2084_v2 }
0x114c   :  { %v904_v19 = vpop.f32.mrf.mxu1 }
0x114d   :  { %v908_v20 = vadd.f32 %v904_v19, %v2271_v44 }
0x114e   :  { %v1928_v21 = vpop.f32.mrf.mxu1 }
0x114f   :  { %v909_v22 = vmul.f32 %v908_v20, %v2300_v13 }
0x1151   :  { %2052 = vtanh.f32 %v909_v22 }
0x115e   :  { %v2053_v23 = vpop.eup %2052 }
0x115f   :  { %v911_v24 = vmul.f32 0.5, %v2053_v23 }
0x1161   :  { %v912_v25 = vadd.f32 0.5, %v911_v24 }
0x1163   :  { %v913_v26 = vsel %vm2291_vm4, %v2053_v23, %v912_v25 }
0x1164   :  { %916 = vrot.lane.b32.xlu0 %v913_v26, %s2087_s2  ;;  %v914_v30 = vmul.f32 %v913_v26, %v826_v16 }
0x11d6   :  { %v917_v27 = vpop.permute.xlu0 %916 }
0x11d7   :  { %v919_v28 = vmul.f32 %v917_v27, %v913_v26 }
0x11d9   :  { %921 = vrot.lane.b32.xlu1 %v919_v28, %s2088_s16 }
0x124b   :  { %v922_v31 = vpop.permute.xlu1 %921 }
0x124c   :  { %v924_v33 = vadd.f32 %v922_v31, %v914_v30 }
0x124e   :  { %2054 = vtanh.f32 %v924_v33 }
0x125b   :  { %v2055_v44 = vpop.eup %2054 }
0x125c   :  { %927 = vrot.lane.b32.xlu0 %v2055_v44, %s2087_s2 }
0x12ce   :  { %v928_v34 = vpop.permute.xlu0 %927 }
0x12cf   :  { %v930_v35 = vmul.f32 %v928_v34, %v913_v26 }
0x12d1   :  { %932 = vrot.lane.b32.xlu1 %v930_v35, %s2088_s16 }
0x1343   :  { %v933_v36 = vpop.permute.xlu1 %932 }
0x1344   :  { %1938 = vmatmul.mubr.msk.f32.vlgmr.msra.gmra.mxu0 %vm246_vm5, %v933_v36 }
0x1345   :  { %1959 = vmatprep.mubr.msk.f32.mxu0 %vm2085_vm1, %v2084_v2 }
0x1404   :  { %v1002_v37 = vpop.f32.mrf.mxu0 }
0x1405   :  { %v1006_v39 = vadd.f32 %v1002_v37, %v2273_v47  ;;  %v2427_v47 = vld [vmem:[%s2612_s4 + $0x18] sm:$0xff] }
0x1406   :  { %v1939_v40 = vpop.f32.mrf.mxu0  ;;  %1941 = vmatpush3.msra.mxu1 %v2427_v47  ;;  %1952 = vmatpush3.msra.mxu0 %v2427_v47 }
0x1407   :  { %v1007_v42 = vmul.f32 %v1006_v39, %v2300_v13  ;;  %1942 = vmatprep.subr.mxu1 %v2084_v2  ;;  %1953 = vmatprep.subr.mxu0 %v2084_v2 }
0x1408   :  { %1943 = vmatpush3.msra.mxu1 %v2432_v56  ;;  %1954 = vmatpush3.msra.mxu0 %v2432_v56 }
0x1409   :  { %2056 = vtanh.f32 %v1007_v42  ;;  %1944 = vmatprep.subr.mxu1 %v2084_v2  ;;  %1955 = vmatprep.subr.mxu0 %v2084_v2 }
0x140a   :  { %1945 = vmatpush3.msra.mxu1 %v2440_v57  ;;  %1956 = vmatpush3.msra.mxu0 %v2440_v57 }
0x140b   :  { %1946 = vmatprep.subr.mxu1 %v2084_v2  ;;  %1957 = vmatprep.subr.mxu0 %v2084_v2 }
0x140c   :  { %1947 = vmatpush3.msra.mxu1 %v2449_v38  ;;  %1958 = vmatpush3.msra.mxu0 %v2449_v38 }
0x140d   :  { %1962 = vmatprep.subr.mxu1 %v2084_v2  ;;  %1973 = vmatprep.subr.mxu0 %v2084_v2 }
0x1416   :  { %v2057_v43 = vpop.eup %2056 }
0x1417   :  { %v1009_v45 = vmul.f32 0.5, %v2057_v43 }
0x1419   :  { %v1010_v46 = vadd.f32 0.5, %v1009_v45 }
0x141b   :  { %v1011_v48 = vsel %vm2291_vm4, %v2057_v43, %v1010_v46 }
0x141c   :  { %1014 = vrot.lane.b32.xlu0 %v1011_v48, %s2087_s2  ;;  %v1012_v29 = vmul.f32 %v1011_v48, %v924_v33 }
0x148e   :  { %v1015_v49 = vpop.permute.xlu0 %1014 }
0x148f   :  { %v1017_v50 = vmul.f32 %v1015_v49, %v1011_v48 }
0x1491   :  { %1019 = vrot.lane.b32.xlu1 %v1017_v50, %s2088_s16 }
0x1503   :  { %v1020_v52 = vpop.permute.xlu1 %1019 }
0x1504   :  { %v1022_v54 = vadd.f32 %v1020_v52, %v1012_v29 }
0x1506   :  { %2058 = vtanh.f32 %v1022_v54 }
0x1513   :  { %v2059_v59 = vpop.eup %2058 }
0x1514   :  { %1025 = vrot.lane.b32.xlu0 %v2059_v59, %s2087_s2 }
0x1586   :  { %v1026_v60 = vpop.permute.xlu0 %1025 }
0x1587   :  { %v1028_v61 = vmul.f32 %v1026_v60, %v1011_v48 }
0x1589   :  { %1030 = vrot.lane.b32.xlu1 %v1028_v61, %s2088_s16 }
0x15fb   :  { %v1031_v63 = vpop.permute.xlu1 %1030 }
0x15fc   :  { %1949 = vmatmul.mubr.msk.f32.vlgmr.msra.gmra.mxu1 %vm246_vm5, %v1031_v63 }
0x15fd   :  { %1963 = vmatpush3.msra.mxu1 %v2427_v47  ;;  %1970 = vmatprep.mubr.msk.f32.mxu1 %vm2085_vm1, %v2084_v2 }
0x15fe   :  { %1964 = vmatprep.subr.mxu1 %v2084_v2 }
0x15ff   :  { %1965 = vmatpush3.msra.mxu1 %v2432_v56 }
0x1600   :  { %1966 = vmatprep.subr.mxu1 %v2084_v2 }
0x1601   :  { %1967 = vmatpush3.msra.mxu1 %v2440_v57 }
0x1602   :  { %1968 = vmatprep.subr.mxu1 %v2084_v2 }
0x1603   :  { %1969 = vmatpush3.msra.mxu1 %v2449_v38 }
0x1604   :  { %1984 = vmatprep.subr.mxu1 %v2084_v2 }
0x16bc   :  { %v1100_v0 = vpop.f32.mrf.mxu1 }
0x16bd   :  { %v1104_v3 = vadd.f32 %v1100_v0, %v213_v4 }
0x16be   :  { %v1950_v9 = vpop.f32.mrf.mxu1 }
0x16bf   :  { %v1105_v10 = vmul.f32 %v1104_v3, %v2300_v13 }
0x16c1   :  { %2060 = vtanh.f32 %v1105_v10 }
0x16ce   :  { %v2061_v5 = vpop.eup %2060 }
0x16cf   :  { %v1107_v12 = vmul.f32 0.5, %v2061_v5 }
0x16d1   :  { %v1108_v7 = vadd.f32 0.5, %v1107_v12 }
0x16d3   :  { %v1109_v14 = vsel %vm2291_vm4, %v2061_v5, %v1108_v7 }
0x16d4   :  { %1112 = vrot.lane.b32.xlu0 %v1109_v14, %s2087_s2  ;;  %v1110_v16 = vmul.f32 %v1109_v14, %v1022_v54 }
0x1746   :  { %v1113_v8 = vpop.permute.xlu0 %1112 }
0x1747   :  { %v1115_v15 = vmul.f32 %v1113_v8, %v1109_v14 }
0x1749   :  { %1117 = vrot.lane.b32.xlu1 %v1115_v15, %s2088_s16  ;;  %v1619_v15 = vld [vmem:[%s2613_s5 + $0x10] sm:$0xff] }
0x17bb   :  { %v1118_v51 = vpop.permute.xlu1 %1117 }
0x17bc   :  { %v1120_v53 = vadd.f32 %v1118_v51, %v1110_v16  ;;  %v1618_v16 = vld [vmem:[%s2613_s5 + $0x8] sm:$0xff]  ;;  %v1617_v51 = vld [vmem:[%s2613_s5] sm:$0xff] }
0x17be   :  { %2062 = vtanh.f32 %v1120_v53 }
0x17cb   :  { %v2063_v41 = vpop.eup %2062 }
0x17cc   :  { %1123 = vrot.lane.b32.xlu0 %v2063_v41, %s2087_s2 }
0x183e   :  { %v1124_v32 = vpop.permute.xlu0 %1123 }
0x183f   :  { %v1126_v17 = vmul.f32 %v1124_v32, %v1109_v14 }
0x1841   :  { %1128 = vrot.lane.b32.xlu1 %v1126_v17, %s2088_s16 }
0x18b3   :  { %v2482_v18 = vpop.permute.xlu1 %1128 }
0x18b4   :  { %1960 = vmatmul.mubr.msk.f32.vlgmr.msra.gmra.mxu0 %vm246_vm5, %v2482_v18 }
0x18b5   :  { %1974 = vmatpush3.msra.mxu0 %v2427_v47  ;;  %1981 = vmatprep.mubr.msk.f32.mxu0 %vm2085_vm1, %v2084_v2 }
0x18b6   :  { %1975 = vmatprep.subr.mxu0 %v2084_v2 }
0x18b7   :  { %1976 = vmatpush3.msra.mxu0 %v2432_v56 }
0x18b8   :  { %1977 = vmatprep.subr.mxu0 %v2084_v2 }
0x18b9   :  { %1978 = vmatpush3.msra.mxu0 %v2440_v57 }
0x18ba   :  { %1979 = vmatprep.subr.mxu0 %v2084_v2 }
0x18bb   :  { %1980 = vmatpush3.msra.mxu0 %v2449_v38 }
0x18bc   :  { %1995 = vmatprep.subr.mxu0 %v2084_v2 }
0x1974   :  { %v1198_v19 = vpop.f32.mrf.mxu0 }
0x1975   :  { %v1202_v20 = vadd.f32 %v1198_v19, %v2280_v55 }
0x1976   :  { %v1961_v21 = vpop.f32.mrf.mxu0 }
0x1977   :  { %v1203_v22 = vmul.f32 %v1202_v20, %v2300_v13 }
0x1979   :  { %2064 = vtanh.f32 %v1203_v22 }
0x1986   :  { %v2065_v23 = vpop.eup %2064 }
0x1987   :  { %v1205_v24 = vmul.f32 0.5, %v2065_v23 }
0x1989   :  { %v1206_v25 = vadd.f32 0.5, %v1205_v24 }
0x198b   :  { %v1207_v26 = vsel %vm2291_vm4, %v2065_v23, %v1206_v25 }
0x198c   :  { %1210 = vrot.lane.b32.xlu0 %v1207_v26, %s2087_s2  ;;  %v1208_v30 = vmul.f32 %v1207_v26, %v1120_v53 }
0x19fe   :  { %v1211_v27 = vpop.permute.xlu0 %1210 }
0x19ff   :  { %v1213_v28 = vmul.f32 %v1211_v27, %v1207_v26 }
0x1a01   :  { %1215 = vrot.lane.b32.xlu1 %v1213_v28, %s2088_s16 }
0x1a73   :  { %v1216_v31 = vpop.permute.xlu1 %1215 }
0x1a74   :  { %v1218_v33 = vadd.f32 %v1216_v31, %v1208_v30 }
0x1a76   :  { %2066 = vtanh.f32 %v1218_v33 }
0x1a83   :  { %v2067_v55 = vpop.eup %2066 }
0x1a84   :  { %1221 = vrot.lane.b32.xlu0 %v2067_v55, %s2087_s2 }
0x1af6   :  { %v1222_v44 = vpop.permute.xlu0 %1221 }
0x1af7   :  { %v1224_v34 = vmul.f32 %v1222_v44, %v1207_v26 }
0x1af9   :  { %1226 = vrot.lane.b32.xlu1 %v1224_v34, %s2088_s16 }
0x1b6b   :  { %v2504_v35 = vpop.permute.xlu1 %1226 }
0x1b6c   :  { %1971 = vmatmul.mubr.msk.f32.vlgmr.msra.gmra.mxu1 %vm246_vm5, %v2504_v35 }
0x1b6d   :  { %1985 = vmatpush3.msra.mxu1 %v2427_v47  ;;  %1992 = vmatprep.mubr.msk.f32.mxu1 %vm2085_vm1, %v2084_v2 }
0x1b6e   :  { %1986 = vmatprep.subr.mxu1 %v2084_v2 }
0x1b6f   :  { %1987 = vmatpush3.msra.mxu1 %v2432_v56 }
0x1b70   :  { %1988 = vmatprep.subr.mxu1 %v2084_v2 }
0x1b71   :  { %1989 = vmatpush3.msra.mxu1 %v2440_v57 }
0x1b72   :  { %1990 = vmatprep.subr.mxu1 %v2084_v2 }
0x1b73   :  { %1991 = vmatpush3.msra.mxu1 %v2449_v38 }
0x1c2c   :  { %v1296_v36 = vpop.f32.mrf.mxu1 }
0x1c2d   :  { %v1300_v37 = vadd.f32 %v1296_v36, %v2283_v58 }
0x1c2e   :  { %v1972_v39 = vpop.f32.mrf.mxu1 }
0x1c2f   :  { %v1301_v40 = vmul.f32 %v1300_v37, %v2300_v13 }
0x1c31   :  { %2068 = vtanh.f32 %v1301_v40 }
0x1c3e   :  { %v2069_v42 = vpop.eup %2068 }
0x1c3f   :  { %v1303_v43 = vmul.f32 0.5, %v2069_v42 }
0x1c41   :  { %v1304_v45 = vadd.f32 0.5, %v1303_v43 }
0x1c43   :  { %v1305_v46 = vsel %vm2291_vm4, %v2069_v42, %v1304_v45 }
0x1c44   :  { %1308 = vrot.lane.b32.xlu0 %v1305_v46, %s2087_s2  ;;  %v1306_v50 = vmul.f32 %v1305_v46, %v1218_v33 }
0x1cb6   :  { %v1309_v48 = vpop.permute.xlu0 %1308 }
0x1cb7   :  { %v1311_v49 = vmul.f32 %v1309_v48, %v1305_v46 }
0x1cb9   :  { %1313 = vrot.lane.b32.xlu1 %v1311_v49, %s2088_s16 }
0x1d2b   :  { %v1314_v29 = vpop.permute.xlu1 %1313 }
0x1d2c   :  { %v1316_v52 = vadd.f32 %v1314_v29, %v1306_v50 }
0x1d2e   :  { %2070 = vtanh.f32 %v1316_v52 }
0x1d3b   :  { %v2071_v58 = vpop.eup %2070 }
0x1d3c   :  { %1319 = vrot.lane.b32.xlu0 %v2071_v58, %s2087_s2 }
0x1dae   :  { %v1320_v54 = vpop.permute.xlu0 %1319 }
0x1daf   :  { %v1322_v59 = vmul.f32 %v1320_v54, %v1305_v46 }
0x1db1   :  { %1324 = vrot.lane.b32.xlu1 %v1322_v59, %s2088_s16 }
0x1e23   :  { %v1325_v60 = vpop.permute.xlu1 %1324 }
0x1e24   :  { %1982 = vmatmul.mubr.msk.f32.vlgmr.msra.gmra.mxu0 %vm246_vm5, %v1325_v60 }
0x1e25   :  { %1996 = vmatpush3.msra.mxu0 %v2427_v47  ;;  %2003 = vmatprep.mubr.msk.f32.mxu0 %vm2085_vm1, %v2084_v2 }
0x1e26   :  { %1997 = vmatprep.subr.mxu0 %v2084_v2 }
0x1e27   :  { %1998 = vmatpush3.msra.mxu0 %v2432_v56 }
0x1e28   :  { %1999 = vmatprep.subr.mxu0 %v2084_v2 }
0x1e29   :  { %2000 = vmatpush3.msra.mxu0 %v2440_v57 }
0x1e2a   :  { %2001 = vmatprep.subr.mxu0 %v2084_v2 }
0x1e2b   :  { %2002 = vmatpush3.msra.mxu0 %v2449_v38 }
0x1ee4   :  { %v1394_v61 = vpop.f32.mrf.mxu0 }
0x1ee5   :  { %v1398_v63 = vadd.f32 %v1394_v61, %v2286_v62  ;;  %v1620_v62 = vld [vmem:[%s2613_s5 + $0x18] sm:$0xff] }
0x1ee6   :  { %v1983_v4 = vpop.f32.mrf.mxu0  ;;  %2006 = vmatprep.subr.mxu1 %v1620_v62 }
0x1ee7   :  { %v1399_v47 = vmul.f32 %v1398_v63, %v2300_v13 }
0x1ee9   :  { %2072 = vtanh.f32 %v1399_v47 }
0x1ef6   :  { %v2073_v0 = vpop.eup %2072 }
0x1ef7   :  { %v1401_v3 = vmul.f32 0.5, %v2073_v0 }
0x1ef9   :  { %v1402_v9 = vadd.f32 0.5, %v1401_v3 }
0x1efb   :  { %v1403_v56 = vsel %vm2291_vm4, %v2073_v0, %v1402_v9 }
0x1efc   :  { %1406 = vrot.lane.b32.xlu0 %v1403_v56, %s2087_s2  ;;  %v1404_v2 = vmul.f32 %v1403_v56, %v1316_v52 }
0x1f6e   :  { %v1407_v57 = vpop.permute.xlu0 %1406 }
0x1f6f   :  { %v1409_v10 = vmul.f32 %v1407_v57, %v1403_v56 }
0x1f71   :  { %1411 = vrot.lane.b32.xlu1 %v1409_v10, %s2088_s16 }
0x1fe3   :  { %v1412_v38 = vpop.permute.xlu1 %1411 }
0x1fe4   :  { %v1414_v5 = vadd.f32 %v1412_v38, %v1404_v2 }
0x1fe6   :  { %2074 = vtanh.f32 %v1414_v5 }
0x1ff3   :  { %v2075_v12 = vpop.eup %2074 }
0x1ff4   :  { %1417 = vrot.lane.b32.xlu0 %v2075_v12, %s2087_s2 }
0x2066   :  { %v1418_v7 = vpop.permute.xlu0 %1417 }
0x2067   :  { %v1420_v14 = vmul.f32 %v1418_v7, %v1403_v56 }
0x2069   :  { %1422 = vrot.lane.b32.xlu1 %v1420_v14, %s2088_s16 }
0x20db   :  { %v1423_v8 = vpop.permute.xlu1 %1422 }
0x20dc   :  { %1993 = vmatmul.mubr.msk.f32.vlgmr.msra.gmra.mxu1 %vm246_vm5, %v1423_v8 }
0x20dd   :  { %2007 = vmatpush3.msra.mxu1 %v1620_v62  ;;  %2014 = vmatprep.mubr.msk.f32.mxu1 %vm246_vm5, %v2482_v18  ;;  %v1765_v18 = vld [vmem:[%s2614_s6] ss:$0 sm:$0xff] }
0x20de   :  { %2008 = vmatprep.subr.mxu1 %v1619_v15 }
0x20df   :  { %2009 = vmatpush3.msra.mxu1 %v1619_v15 }
0x20e0   :  { %2010 = vmatprep.subr.mxu1 %v1618_v16 }
0x20e1   :  { %2011 = vmatpush3.msra.mxu1 %v1618_v16 }
0x20e2   :  { %2012 = vmatprep.subr.mxu1 %v1617_v51 }
0x20e3   :  { %2013 = vmatpush3.msra.mxu1 %v1617_v51 }
0x20e4   :  { %2015 = vmatmul.mubr.msk.f32.vlgmr.msra.gmra.mxu1 %vm246_vm5, %v2504_v35 }
0x20e5   :  { %2017 = vmatprep.mubr.msk.f32.mxu1 %vm246_vm5, %v1325_v60 }
0x20e8   :  { %2018 = vmatmul.mubr.msk.f32.gmra.mxu1 %vm246_vm5, %v1423_v8 }
0x219c   :  { %v1492_v53 = vpop.f32.mrf.mxu1 }
0x219d   :  { %v1496_v41 = vadd.f32 %v1492_v53, %v2289_v1 }
0x219e   :  { %v1994_v32 = vpop.f32.mrf.mxu1 }
0x219f   :  { %v1497_v17 = vmul.f32 %v1496_v41, %v2300_v13 }
0x21a1   :  { %2076 = vtanh.f32 %v1497_v17 }
0x21a4   :  { %v2016_v19 = vpop.f32.mrf.mxu1 }
0x21a5   :  { %v1705_v20 = vadd.f32 %v2016_v19, %v1765_v18 }
0x21a6   :  { %v1699_v21 = vpop.f32.mrf.mxu1 }
0x21a7   :  { %1729 = vst.msk [vmem:[%s2615_s7 + $0x8] sm:$0xff] %vm62_vm0, %v1705_v20  ;;  %v1700_v22 = vadd.f32 %v1765_v18, %v1699_v21 }
0x21a8   :  { %v2019_v23 = vpop.f32.mrf.mxu1 }
0x21a9   :  { %1728 = vst.msk [vmem:[%s2615_s7] sm:$0xff] %vm62_vm0, %v1700_v22  ;;  %v1715_v1 = vadd.f32 %v2019_v23, %v1765_v18 }
0x21aa   :  { %v1709_v24 = vpop.f32.mrf.mxu1 }
0x21ab   :  { %1731 = vst.msk [vmem:[%s2615_s7 + $0x18] sm:$0xff] %vm62_vm0, %v1715_v1  ;;  %v1710_v25 = vadd.f32 %v1765_v18, %v1709_v24 }
0x21ad   :  { %1730 = vst.msk [vmem:[%s2615_s7 + $0x10] sm:$0xff] %vm62_vm0, %v1710_v25 }
0x21ae   :  { %v2077_v26 = vpop.eup %2076 }
0x21af   :  { %v1499_v27 = vmul.f32 0.5, %v2077_v26 }
0x21b1   :  { %v1500_v28 = vadd.f32 0.5, %v1499_v27 }
0x21b3   :  { %v1501_v30 = vsel %vm2291_vm4, %v2077_v26, %v1500_v28 }
0x21b4   :  { %1504 = vrot.lane.b32.xlu0 %v1501_v30, %s2087_s2  ;;  %v1502_v55 = vmul.f32 %v1501_v30, %v1414_v5 }
0x2226   :  { %v1505_v31 = vpop.permute.xlu0 %1504 }
0x2227   :  { %v1507_v33 = vmul.f32 %v1505_v31, %v1501_v30 }
0x2229   :  { %1509 = vrot.lane.b32.xlu1 %v1507_v33, %s2088_s16 }
0x229b   :  { %v1510_v44 = vpop.permute.xlu1 %1509 }
0x229c   :  { %v1512_v34 = vadd.f32 %v1510_v44, %v1502_v55 }
0x229e   :  { %2078 = vtanh.f32 %v1512_v34 }
0x22ab   :  { %v2079_v35 = vpop.eup %2078 }
0x22ac   :  { %1515 = vrot.lane.b32.xlu0 %v2079_v35, %s2087_s2 }
0x231e   :  { %v1516_v36 = vpop.permute.xlu0 %1515 }
0x231f   :  { %v1518_v37 = vmul.f32 %v1516_v36, %v1501_v30 }
0x2321   :  { %1520 = vrot.lane.b32.xlu1 %v1518_v37, %s2088_s16 }
0x2393   :  { %v1521_v39 = vpop.permute.xlu1 %1520 }
0x2394   :  { %2004 = vmatmul.mubr.msk.f32.vlgmr.msra.gmra.mxu0 %vm246_vm5, %v1521_v39  ;;  %2020 = vmatprep.mubr.msk.f32.mxu1 %vm246_vm5, %v1521_v39 }
0x2454   :  { %v1590_v40 = vpop.f32.mrf.mxu0 }
0x2455   :  { %v1594_v42 = vadd.f32 %v1590_v40, %v2296_v11 }
0x2456   :  { %v2005_v43 = vpop.f32.mrf.mxu0 }
0x2457   :  { %v1595_v45 = vmul.f32 %v1594_v42, %v2300_v13 }
0x2459   :  { %2080 = vtanh.f32 %v1595_v45 }
0x2466   :  { %v2081_v46 = vpop.eup %2080 }
0x2467   :  { %v1597_v48 = vmul.f32 0.5, %v2081_v46 }
0x2469   :  { %v1598_v49 = vadd.f32 0.5, %v1597_v48 }
0x246b   :  { %v1599_v50 = vsel %vm2291_vm4, %v2081_v46, %v1598_v49 }
0x246c   :  { %1602 = vrot.lane.b32.xlu0 %v1599_v50, %s2087_s2  ;;  %v1600_v58 = vmul.f32 %v1599_v50, %v1512_v34 }
0x24de   :  { %v1603_v29 = vpop.permute.xlu0 %1602 }
0x24df   :  { %v1605_v52 = vmul.f32 %v1603_v29, %v1599_v50 }
0x24e1   :  { %1607 = vrot.lane.b32.xlu1 %v1605_v52, %s2088_s16 }
0x2553   :  { %v1608_v54 = vpop.permute.xlu1 %1607 }
0x2554   :  { %v1610_v59 = vadd.f32 %v1608_v54, %v1600_v58 }
0x2556   :  { %2082 = vtanh.f32 %v1610_v59 }
0x2563   :  { %v2083_v11 = vpop.eup %2082 }
0x2564   :  { %1613 = vrot.lane.b32.xlu0 %v2083_v11, %s2087_s2 }
0x25d6   :  { %v1614_v13 = vpop.permute.xlu0 %1613 }
0x25d7   :  { %v1616_v60 = vmul.f32 %v1614_v13, %v1599_v50 }
0x25d9   :  { %1629 = vrot.lane.b32.xlu1 %v1616_v60, %s2088_s16 }
0x264b   :  { %v1630_v61 = vpop.permute.xlu1 %1629 }
0x264c   :  { %2021 = vmatmul.mubr.msk.f32.gmra.mxu1 %vm246_vm5, %v1630_v61 }
0x270c   :  { %v2022_v6 = vpop.f32.mrf.mxu1 }
0x270d   :  { %v1725_v63 = vadd.f32 %v2022_v6, %v1765_v18 }
0x270e   :  { %v1719_v4 = vpop.f32.mrf.mxu1 }
0x270f   :  { %1733 = vst.msk [vmem:[%s2615_s7 + $0x28] sm:$0xff] %vm62_vm0, %v1725_v63  ;;  %v1720_v47 = vadd.f32 %v1765_v18, %v1719_v4 }
0x2711   :  { %1732 = vst.msk [vmem:[%s2615_s7 + $0x20] sm:$0xff] %vm62_vm0, %v1720_v47 }

</bundles_post_ra>
